<compile_context>
chip_gen: v5e
topology: v5e:2x2
jax: 0.10.0
libtpu: 0.0.40
codegen_flags: <defaults>
</compile_context>

<pallas_src>
import functools

import jax
import jax.numpy as jnp
from jax import lax
from jax.experimental import pallas as pl
from jax.experimental.pallas import tpu as pltpu


# ----------------------------------------------------------------------------
# Fused Pallas kernel: L-layer LSTM (wavefront over time x layer) + FC head
# ----------------------------------------------------------------------------
def _char_rnn_fused_kernel(*refs, n_layers, seq_len, batch_pad, hidden):
    L, S, B, H = n_layers, seq_len, batch_pad, hidden
    f32, bf16 = jnp.float32, jnp.bfloat16

    # ---- unpack refs (inputs, outputs, scratch) -----------------------------
    it = iter(refs)
    x_ref = next(it)                                    # (S*B, V) bf16, time-major
    lstm_refs = [(next(it), next(it), next(it)) for _ in range(L)]
    wfc_ref, bfc_ref = next(it), next(it)               # (H, Vp) bf16, (1, Vp) f32
    h0_ref, c0_ref = next(it), next(it)                 # (L, B, H) f32
    out_ref, hT_ref, cT_ref = next(it), next(it), next(it)
    xp_ref, y_ref = next(it), next(it)                  # (S*B, 4H) f32, (S*B, H) bf16

    # Hoisted loads of the (tiny) weights so the unrolled loop reuses one value.
    wih = [r[...] for (r, _, _) in lstm_refs]           # (I, 4H) bf16
    whh = [r[...] for (_, r, _) in lstm_refs]           # (H, 4H) bf16
    bias = [r[...] for (_, _, r) in lstm_refs]          # (1, 4H) f32

    # Single-sigmoid gate trick: tanh(x) = 2*sigmoid(2x) - 1 on the g-gate lanes.
    # Hoisted lane-masked constants (scale doubles as the post-multiplier).
    lane = lax.broadcasted_iota(jnp.int32, (B, 4 * H), 1)
    is_g = (lane >= 2 * H) & (lane < 3 * H)
    gate_scale = jnp.where(is_g, jnp.float32(2.0), jnp.float32(1.0))
    gate_shift = jnp.where(is_g, jnp.float32(-1.0), jnp.float32(0.0))

    # Layer-0 input projection hoisted out of the recurrence: one fat MXU matmul.
    xp_ref[...] = (jnp.dot(x_ref[...], wih[0], preferred_element_type=f32)
                   + bias[0])

    # Per-layer carried state.
    h = [h0_ref[l] for l in range(L)]                   # f32 (B, H)
    c = [c0_ref[l] for l in range(L)]                   # f32 (B, H)
    h_bf = [h[l].astype(bf16) for l in range(L)]        # bf16 MXU operand
    y_prev = [None] * L                                 # layer l's newest bf16 output

    # Wavefront over (time, layer): at step w, layer l processes time t = w - l.
    # Iterate layers high->low so layer l still sees layer l-1's output at time t
    # (written during wavefront step w-1).
    for w in range(S + L - 1):
        for l in reversed(range(L)):
            t = w - l
            if t < 0 or t >= S:
                continue
            row = t * B                                 # B is a multiple of 8: aligned
            if l == 0:
                gates = xp_ref[row:row + B, :] + jnp.dot(
                    h_bf[0], whh[0], preferred_element_type=f32)
            else:
                gates = (jnp.dot(y_prev[l - 1], wih[l], preferred_element_type=f32)
                         + jnp.dot(h_bf[l], whh[l], preferred_element_type=f32)
                         + bias[l])
            # One full-width sigmoid; g lanes fixed up with hoisted scale/shift.
            acts = jax.nn.sigmoid(gates * gate_scale) * gate_scale + gate_shift
            i_g = acts[:, 0 * H:1 * H]
            f_g = acts[:, 1 * H:2 * H]
            g_g = acts[:, 2 * H:3 * H]
            o_g = acts[:, 3 * H:4 * H]
            c_new = f_g * c[l] + i_g * g_g
            h_new = o_g * jnp.tanh(c_new)
            h_new_bf = h_new.astype(bf16)
            c[l], h[l], h_bf[l], y_prev[l] = c_new, h_new, h_new_bf, h_new_bf
            if l == L - 1:
                # Only the last layer's outputs are needed (FC head input), bf16.
                y_ref[row:row + B, :] = h_new_bf

    for l in range(L):
        hT_ref[l] = h[l]
        cT_ref[l] = c[l]

    # FC head over all (time-major) last-layer hidden states, lane-dense output
    # (vocab zero-padded to a multiple of 128 lanes -> unmasked full vst).
    out_ref[...] = (jnp.dot(y_ref[...], wfc_ref[...], preferred_element_type=f32)
                    + bfc_ref[...])


# ----------------------------------------------------------------------------
# Wrapper
# ----------------------------------------------------------------------------
def _prep_weights(params, dtype=jnp.bfloat16):
    """Transpose PyTorch-layout weights for the kernel; MXU operands in bf16."""
    lstm = []
    for p in params["lstm"]:
        lstm.append((
            jnp.asarray(p["w_ih"].T, dtype),                             # (I, 4H)
            jnp.asarray(p["w_hh"].T, dtype),                             # (H, 4H)
            jnp.asarray((p["b_ih"] + p["b_hh"])[None, :], jnp.float32),  # (1, 4H)
        ))
    wfc = jnp.asarray(params["fc"]["w"].T, dtype)                        # (H, V)
    bfc = jnp.asarray(params["fc"]["b"][None, :], jnp.float32)           # (1, V)
    return lstm, (wfc, bfc)


def char_rnn_forward(params, x, hidden):
    """x: (B, S, V) batch_first; hidden: (h0, c0) each (L, B, H).
    Returns (out: (B*S, V), (hT, cT)) matching the PyTorch eval-mode forward."""
    h0, c0 = hidden
    L, B, H = h0.shape
    _, S, V = x.shape

    BP = ((B + 7) // 8) * 8          # pad batch to a full sublane tile
    VP = ((V + 127) // 128) * 128    # lane-dense FC output

    lstm_w, (wfc, bfc) = _prep_weights(params)
    wfc_p = jnp.pad(wfc, ((0, 0), (0, VP - V)))
    bfc_p = jnp.pad(bfc, ((0, 0), (0, VP - V)))

    # Time-major flatten of the input (bf16 for the MXU), batch padded to BP rows.
    xt = jnp.transpose(x, (1, 0, 2)).astype(jnp.bfloat16)          # (S, B, V)
    xt = jnp.pad(xt, ((0, 0), (0, BP - B), (0, 0)))
    x2d = xt.reshape(S * BP, V)
    h0p = jnp.pad(h0.astype(jnp.float32), ((0, 0), (0, BP - B), (0, 0)))
    c0p = jnp.pad(c0.astype(jnp.float32), ((0, 0), (0, BP - B), (0, 0)))

    args = [x2d]
    in_specs = [pl.BlockSpec((S * BP, V), lambda: (0, 0))]
    for l in range(L):
        wih, whh, b = lstm_w[l]
        args += [wih, whh, b]
        in_specs += [pl.BlockSpec(wih.shape, lambda: (0, 0)),
                     pl.BlockSpec(whh.shape, lambda: (0, 0)),
                     pl.BlockSpec(b.shape, lambda: (0, 0))]
    args += [wfc_p, bfc_p, h0p, c0p]
    in_specs += [pl.BlockSpec(wfc_p.shape, lambda: (0, 0)),
                 pl.BlockSpec(bfc_p.shape, lambda: (0, 0)),
                 pl.BlockSpec((L, BP, H), lambda: (0, 0, 0)),
                 pl.BlockSpec((L, BP, H), lambda: (0, 0, 0))]

    out_shape = (jax.ShapeDtypeStruct((S * BP, VP), jnp.float32),
                 jax.ShapeDtypeStruct((L, BP, H), jnp.float32),
                 jax.ShapeDtypeStruct((L, BP, H), jnp.float32))
    out_specs = (pl.BlockSpec((S * BP, VP), lambda: (0, 0)),
                 pl.BlockSpec((L, BP, H), lambda: (0, 0, 0)),
                 pl.BlockSpec((L, BP, H), lambda: (0, 0, 0)))

    scratch_shapes = [pltpu.VMEM((S * BP, 4 * H), jnp.float32),   # layer-0 xp
                      pltpu.VMEM((S * BP, H), jnp.bfloat16)]      # last-layer hiddens

    flops = (2 * S * BP * V * 4 * H                 # layer-0 hoisted input projection
             + 2 * S * BP * H * 4 * H * (L - 1)     # deeper-layer input projections
             + 2 * S * BP * H * 4 * H * L           # recurrent matmuls
             + 2 * S * BP * H * VP)                 # FC head
    transcendentals = L * S * BP * 5 * H            # 1 full-width sigmoid + tanh(c)
    bytes_accessed = (sum(int(a.size) * a.dtype.itemsize for a in args)
                      + (S * BP * VP + 2 * L * BP * H) * 4)

    kernel = functools.partial(_char_rnn_fused_kernel,
                               n_layers=L, seq_len=S, batch_pad=BP, hidden=H)

    out_tm, hTp, cTp = pl.pallas_call(
        kernel,
        out_shape=out_shape,
        in_specs=in_specs,
        out_specs=out_specs,
        scratch_shapes=scratch_shapes,
        cost_estimate=pl.CostEstimate(flops=flops,
                                      transcendentals=transcendentals,
                                      bytes_accessed=bytes_accessed),
    )(*args)

    # Strip batch/vocab padding and reorder time-major -> PyTorch's batch_first
    # out.view(-1, n_hidden) row ordering (row = b*S + s).
    out = (out_tm.reshape(S, BP, VP)[:, :B, :V]
           .transpose(1, 0, 2).reshape(B * S, V))
    return out, (hTp[:, :B, :], cTp[:, :B, :])


# ----------------------------------------------------------------------------
# Pure-JAX reference mirroring the kernel's bf16-MXU / f32-elementwise math
# ----------------------------------------------------------------------------
def ref_forward(params, x, hidden):
    h0, c0 = hidden
    L, B, H = h0.shape
    _, S, V = x.shape
    lstm_w, (wfc, bfc) = _prep_weights(params)
    f32, bf16 = jnp.float32, jnp.bfloat16

    xs = jnp.transpose(x, (1, 0, 2)).astype(bf16)       # (S, B, V)
    hs = [h0[l].astype(f32) for l in range(L)]
    cs = [c0[l].astype(f32) for l in range(L)]
    ys = []
    for t in range(S):
        layer_in = xs[t]
        for l in range(L):
            wih, whh, b = lstm_w[l]
            gates = (jnp.dot(layer_in, wih, preferred_element_type=f32)
                     + jnp.dot(hs[l].astype(bf16), whh, preferred_element_type=f32)
                     + b)
            i = jax.nn.sigmoid(gates[:, :H])
            f = jax.nn.sigmoid(gates[:, H:2 * H])
            g = jnp.tanh(gates[:, 2 * H:3 * H])
            o = jax.nn.sigmoid(gates[:, 3 * H:])
            cs[l] = f * cs[l] + i * g
            hs[l] = o * jnp.tanh(cs[l])
            layer_in = hs[l].astype(bf16)
        ys.append(layer_in)
    y = jnp.stack(ys, 0).reshape(S * B, H)               # time-major bf16
    out_tm = jnp.dot(y, wfc, preferred_element_type=f32) + bfc
    out = out_tm.reshape(S, B, V).transpose(1, 0, 2).reshape(B * S, V)
    return out, (jnp.stack(hs, 0), jnp.stack(cs, 0))


# ----------------------------------------------------------------------------
# Main
# ----------------------------------------------------------------------------
if __name__ == "__main__":
    VOCAB = 32       # len(self.chars)
    HIDDEN = 32      # n_hidden
    LAYERS = 2       # n_layers
    BATCH = 2
    SEQ = 8

    key = jax.random.PRNGKey(0)
    keys = jax.random.split(key, 16)
    scale = 1.0 / jnp.sqrt(HIDDEN)

    def U(k, shape):
        return jax.random.uniform(k, shape, jnp.float32, -scale, scale)

    params = {"lstm": [], "fc": {}}
    ki = 0
    for l in range(LAYERS):
        in_dim = VOCAB if l == 0 else HIDDEN
        params["lstm"].append({
            "w_ih": U(keys[ki + 0], (4 * HIDDEN, in_dim)),
            "w_hh": U(keys[ki + 1], (4 * HIDDEN, HIDDEN)),
            "b_ih": U(keys[ki + 2], (4 * HIDDEN,)),
            "b_hh": U(keys[ki + 3], (4 * HIDDEN,)),
        })
        ki += 4
    params["fc"]["w"] = U(keys[ki], (VOCAB, HIDDEN))
    params["fc"]["b"] = U(keys[ki + 1], (VOCAB,))
    ki += 2

    x = jax.random.normal(keys[ki], (BATCH, SEQ, VOCAB), jnp.float32)
    h0 = jax.random.normal(keys[ki + 1], (LAYERS, BATCH, HIDDEN), jnp.float32) * 0.1
    c0 = jax.random.normal(keys[ki + 2], (LAYERS, BATCH, HIDDEN), jnp.float32) * 0.1

    fwd = jax.jit(char_rnn_forward)
    out, (hT, cT) = fwd(params, x, (h0, c0))
    out = jax.block_until_ready(out)
    hT = jax.block_until_ready(hT)
    cT = jax.block_until_ready(cT)

    # Sanity-check against the pure-JAX reference (same bf16 quantization points).
    out_ref, (hT_ref, cT_ref) = ref_forward(params, x, (h0, c0))
    assert out.shape == (BATCH * SEQ, VOCAB)
    assert hT.shape == (LAYERS, BATCH, HIDDEN) and cT.shape == (LAYERS, BATCH, HIDDEN)
    assert jnp.allclose(out, out_ref, atol=2e-3, rtol=2e-3)
    assert jnp.allclose(hT, hT_ref, atol=2e-3, rtol=2e-3)
    assert jnp.allclose(cT, cT_ref, atol=2e-3, rtol=2e-3)

    print("KERNEL_OK")
</pallas_src>

<mosaic_0001>
module attributes {stable_mosaic.version = 11 : i64} {
  func.func @_char_rnn_fused_kernel(%arg0: memref<64x32xbf16, #tpu.memory_space<vmem>>, %arg1: memref<32x128xbf16, #tpu.memory_space<vmem>>, %arg2: memref<32x128xbf16, #tpu.memory_space<vmem>>, %arg3: memref<1x128xf32, #tpu.memory_space<vmem>>, %arg4: memref<32x128xbf16, #tpu.memory_space<vmem>>, %arg5: memref<32x128xbf16, #tpu.memory_space<vmem>>, %arg6: memref<1x128xf32, #tpu.memory_space<vmem>>, %arg7: memref<32x128xbf16, #tpu.memory_space<vmem>>, %arg8: memref<1x128xf32, #tpu.memory_space<vmem>>, %arg9: memref<2x8x32xf32, #tpu.memory_space<vmem>>, %arg10: memref<2x8x32xf32, #tpu.memory_space<vmem>>, %arg11: memref<64x128xf32, #tpu.memory_space<vmem>>, %arg12: memref<2x8x32xf32, #tpu.memory_space<vmem>>, %arg13: memref<2x8x32xf32, #tpu.memory_space<vmem>>, %arg14: memref<64x128xf32, #tpu.memory_space<vmem>>, %arg15: memref<64x32xbf16, #tpu.memory_space<vmem>>) attributes {dimension_semantics = [], scalar_prefetch = 0 : i64, scratch_operands = 2 : i64, tpu.core_type = #tpu.core_type<tc>} {
    %c0 = arith.constant 0 : index
    %c0_0 = arith.constant 0 : index
    %0 = vector.load %arg1[%c0, %c0_0] : memref<32x128xbf16, #tpu.memory_space<vmem>>, vector<32x128xbf16>
    %c0_1 = arith.constant 0 : index
    %c0_2 = arith.constant 0 : index
    %1 = vector.load %arg4[%c0_1, %c0_2] : memref<32x128xbf16, #tpu.memory_space<vmem>>, vector<32x128xbf16>
    %c0_3 = arith.constant 0 : index
    %c0_4 = arith.constant 0 : index
    %2 = vector.load %arg2[%c0_3, %c0_4] : memref<32x128xbf16, #tpu.memory_space<vmem>>, vector<32x128xbf16>
    %c0_5 = arith.constant 0 : index
    %c0_6 = arith.constant 0 : index
    %3 = vector.load %arg5[%c0_5, %c0_6] : memref<32x128xbf16, #tpu.memory_space<vmem>>, vector<32x128xbf16>
    %c0_7 = arith.constant 0 : index
    %c0_8 = arith.constant 0 : index
    %4 = vector.load %arg3[%c0_7, %c0_8] : memref<1x128xf32, #tpu.memory_space<vmem>>, vector<1x128xf32>
    %c0_9 = arith.constant 0 : index
    %c0_10 = arith.constant 0 : index
    %5 = vector.load %arg6[%c0_9, %c0_10] : memref<1x128xf32, #tpu.memory_space<vmem>>, vector<1x128xf32>
    %6 = tpu.iota {dimensions = array<i32: 1>} : vector<8x128xi32>
    %c64_i32 = arith.constant 64 : i32
    %7 = vector.broadcast %c64_i32 : i32 to vector<8x128xi32>
    %8 = arith.cmpi sge, %6, %7 : vector<8x128xi32>
    %c96_i32 = arith.constant 96 : i32
    %9 = vector.broadcast %c96_i32 : i32 to vector<8x128xi32>
    %10 = arith.cmpi slt, %6, %9 : vector<8x128xi32>
    %11 = arith.andi %8, %10 : vector<8x128xi1>
    %cst = arith.constant 2.000000e+00 : f32
    %cst_11 = arith.constant 1.000000e+00 : f32
    %12 = vector.broadcast %cst : f32 to vector<8x128xf32>
    %13 = vector.broadcast %cst_11 : f32 to vector<8x128xf32>
    %14 = arith.select %11, %12, %13 : vector<8x128xi1>, vector<8x128xf32>
    %cst_12 = arith.constant -1.000000e+00 : f32
    %cst_13 = arith.constant 0.000000e+00 : f32
    %15 = vector.broadcast %cst_12 : f32 to vector<8x128xf32>
    %16 = vector.broadcast %cst_13 : f32 to vector<8x128xf32>
    %17 = arith.select %11, %15, %16 : vector<8x128xi1>, vector<8x128xf32>
    %c0_14 = arith.constant 0 : index
    %c0_15 = arith.constant 0 : index
    %18 = vector.load %arg0[%c0_14, %c0_15] : memref<64x32xbf16, #tpu.memory_space<vmem>>, vector<64x32xbf16>
    %cst_16 = arith.constant dense<0.000000e+00> : vector<64x128xf32>
    %19 = tpu.matmul %18, %0, %cst_16 {dimension_numbers = #tpu.dot_dimension_numbers<[1], [0], [0], [1], [0, 0, 1, 1], [], []>} : vector<64x32xbf16>, vector<32x128xbf16>, vector<64x128xf32> -> vector<64x128xf32>
    %20 = vector.broadcast %4 : vector<1x128xf32> to vector<64x128xf32>
    %21 = arith.addf %19, %20 : vector<64x128xf32>
    %c0_17 = arith.constant 0 : index
    %c0_18 = arith.constant 0 : index
    %22 = vector.load %arg14[%c0_17, %c0_18] : memref<64x128xf32, #tpu.memory_space<vmem>>, vector<64x128xf32>
    tpu.vector_store %arg14[%c0_17, %c0_18], %21 {strides = array<i32>} : memref<64x128xf32, #tpu.memory_space<vmem>>, vector<64x128xf32>,
    %c0_19 = arith.constant 0 : index
    %c0_20 = arith.constant 0 : index
    %c0_21 = arith.constant 0 : index
    %23 = vector.load %arg9[%c0_19, %c0_20, %c0_21] : memref<2x8x32xf32, #tpu.memory_space<vmem>>, vector<1x8x32xf32>
    %24 = vector.shape_cast %23 : vector<1x8x32xf32> to vector<8x32xf32>
    %c1 = arith.constant 1 : index
    %c0_22 = arith.constant 0 : index
    %c0_23 = arith.constant 0 : index
    %25 = vector.load %arg9[%c1, %c0_22, %c0_23] : memref<2x8x32xf32, #tpu.memory_space<vmem>>, vector<1x8x32xf32>
    %26 = vector.shape_cast %25 : vector<1x8x32xf32> to vector<8x32xf32>
    %c0_24 = arith.constant 0 : index
    %c0_25 = arith.constant 0 : index
    %c0_26 = arith.constant 0 : index
    %27 = vector.load %arg10[%c0_24, %c0_25, %c0_26] : memref<2x8x32xf32, #tpu.memory_space<vmem>>, vector<1x8x32xf32>
    %28 = vector.shape_cast %27 : vector<1x8x32xf32> to vector<8x32xf32>
    %c1_27 = arith.constant 1 : index
    %c0_28 = arith.constant 0 : index
    %c0_29 = arith.constant 0 : index
    %29 = vector.load %arg10[%c1_27, %c0_28, %c0_29] : memref<2x8x32xf32, #tpu.memory_space<vmem>>, vector<1x8x32xf32>
    %30 = vector.shape_cast %29 : vector<1x8x32xf32> to vector<8x32xf32>
    %31 = arith.truncf %24 : vector<8x32xf32> to vector<8x32xbf16>
    %32 = arith.truncf %26 : vector<8x32xf32> to vector<8x32xbf16>
    %c0_30 = arith.constant 0 : index
    %c0_31 = arith.constant 0 : index
    %33 = vector.load %arg14[%c0_30, %c0_31] : memref<64x128xf32, #tpu.memory_space<vmem>>, vector<8x128xf32>
    %cst_32 = arith.constant dense<0.000000e+00> : vector<8x128xf32>
    %34 = tpu.matmul %31, %2, %cst_32 {dimension_numbers = #tpu.dot_dimension_numbers<[1], [0], [0], [1], [0, 0, 1, 1], [], []>} : vector<8x32xbf16>, vector<32x128xbf16>, vector<8x128xf32> -> vector<8x128xf32>
    %35 = arith.addf %33, %34 : vector<8x128xf32>
    %36 = arith.mulf %35, %14 : vector<8x128xf32>
    %37 = arith.negf %36 : vector<8x128xf32>
    %38 = math.exp %37 : vector<8x128xf32>
    %cst_33 = arith.constant 1.000000e+00 : f32
    %39 = vector.broadcast %cst_33 : f32 to vector<8x128xf32>
    %40 = arith.addf %39, %38 : vector<8x128xf32>
    %41 = arith.divf %39, %40 : vector<8x128xf32>
    %42 = arith.mulf %41, %14 : vector<8x128xf32>
    %43 = arith.addf %42, %17 : vector<8x128xf32>
    %44 = vector.extract_strided_slice %43 {offsets = [0, 0], sizes = [8, 32], strides = [1, 1]} : vector<8x128xf32> to vector<8x32xf32>
    %45 = vector.extract_strided_slice %43 {offsets = [0, 32], sizes = [8, 32], strides = [1, 1]} : vector<8x128xf32> to vector<8x32xf32>
    %46 = vector.extract_strided_slice %43 {offsets = [0, 64], sizes = [8, 32], strides = [1, 1]} : vector<8x128xf32> to vector<8x32xf32>
    %47 = vector.extract_strided_slice %43 {offsets = [0, 96], sizes = [8, 32], strides = [1, 1]} : vector<8x128xf32> to vector<8x32xf32>
    %48 = arith.mulf %45, %28 : vector<8x32xf32>
    %49 = arith.mulf %44, %46 : vector<8x32xf32>
    %50 = arith.addf %48, %49 : vector<8x32xf32>
    %51 = math.tanh %50 : vector<8x32xf32>
    %52 = arith.mulf %47, %51 : vector<8x32xf32>
    %53 = arith.truncf %52 : vector<8x32xf32> to vector<8x32xbf16>
    %cst_34 = arith.constant dense<0.000000e+00> : vector<8x128xf32>
    %54 = tpu.matmul %53, %1, %cst_34 {dimension_numbers = #tpu.dot_dimension_numbers<[1], [0], [0], [1], [0, 0, 1, 1], [], []>} : vector<8x32xbf16>, vector<32x128xbf16>, vector<8x128xf32> -> vector<8x128xf32>
    %cst_35 = arith.constant dense<0.000000e+00> : vector<8x128xf32>
    %55 = tpu.matmul %32, %3, %cst_35 {dimension_numbers = #tpu.dot_dimension_numbers<[1], [0], [0], [1], [0, 0, 1, 1], [], []>} : vector<8x32xbf16>, vector<32x128xbf16>, vector<8x128xf32> -> vector<8x128xf32>
    %56 = arith.addf %54, %55 : vector<8x128xf32>
    %57 = vector.broadcast %5 : vector<1x128xf32> to vector<8x128xf32>
    %58 = arith.addf %56, %57 : vector<8x128xf32>
    %59 = arith.mulf %58, %14 : vector<8x128xf32>
    %60 = arith.negf %59 : vector<8x128xf32>
    %61 = math.exp %60 : vector<8x128xf32>
    %cst_36 = arith.constant 1.000000e+00 : f32
    %62 = vector.broadcast %cst_36 : f32 to vector<8x128xf32>
    %63 = arith.addf %62, %61 : vector<8x128xf32>
    %64 = arith.divf %62, %63 : vector<8x128xf32>
    %65 = arith.mulf %64, %14 : vector<8x128xf32>
    %66 = arith.addf %65, %17 : vector<8x128xf32>
    %67 = vector.extract_strided_slice %66 {offsets = [0, 0], sizes = [8, 32], strides = [1, 1]} : vector<8x128xf32> to vector<8x32xf32>
    %68 = vector.extract_strided_slice %66 {offsets = [0, 32], sizes = [8, 32], strides = [1, 1]} : vector<8x128xf32> to vector<8x32xf32>
    %69 = vector.extract_strided_slice %66 {offsets = [0, 64], sizes = [8, 32], strides = [1, 1]} : vector<8x128xf32> to vector<8x32xf32>
    %70 = vector.extract_strided_slice %66 {offsets = [0, 96], sizes = [8, 32], strides = [1, 1]} : vector<8x128xf32> to vector<8x32xf32>
    %71 = arith.mulf %68, %30 : vector<8x32xf32>
    %72 = arith.mulf %67, %69 : vector<8x32xf32>
    %73 = arith.addf %71, %72 : vector<8x32xf32>
    %74 = math.tanh %73 : vector<8x32xf32>
    %75 = arith.mulf %70, %74 : vector<8x32xf32>
    %76 = arith.truncf %75 : vector<8x32xf32> to vector<8x32xbf16>
    %c0_37 = arith.constant 0 : index
    %c0_38 = arith.constant 0 : index
    %77 = vector.load %arg15[%c0_37, %c0_38] : memref<64x32xbf16, #tpu.memory_space<vmem>>, vector<8x32xbf16>
    tpu.vector_store %arg15[%c0_37, %c0_38], %76 {strides = array<i32>} : memref<64x32xbf16, #tpu.memory_space<vmem>>, vector<8x32xbf16>,
    %c8 = arith.constant 8 : index
    %c0_39 = arith.constant 0 : index
    %78 = vector.load %arg14[%c8, %c0_39] : memref<64x128xf32, #tpu.memory_space<vmem>>, vector<8x128xf32>
    %cst_40 = arith.constant dense<0.000000e+00> : vector<8x128xf32>
    %79 = tpu.matmul %53, %2, %cst_40 {dimension_numbers = #tpu.dot_dimension_numbers<[1], [0], [0], [1], [0, 0, 1, 1], [], []>} : vector<8x32xbf16>, vector<32x128xbf16>, vector<8x128xf32> -> vector<8x128xf32>
    %80 = arith.addf %78, %79 : vector<8x128xf32>
    %81 = arith.mulf %80, %14 : vector<8x128xf32>
    %82 = arith.negf %81 : vector<8x128xf32>
    %83 = math.exp %82 : vector<8x128xf32>
    %cst_41 = arith.constant 1.000000e+00 : f32
    %84 = vector.broadcast %cst_41 : f32 to vector<8x128xf32>
    %85 = arith.addf %84, %83 : vector<8x128xf32>
    %86 = arith.divf %84, %85 : vector<8x128xf32>
    %87 = arith.mulf %86, %14 : vector<8x128xf32>
    %88 = arith.addf %87, %17 : vector<8x128xf32>
    %89 = vector.extract_strided_slice %88 {offsets = [0, 0], sizes = [8, 32], strides = [1, 1]} : vector<8x128xf32> to vector<8x32xf32>
    %90 = vector.extract_strided_slice %88 {offsets = [0, 32], sizes = [8, 32], strides = [1, 1]} : vector<8x128xf32> to vector<8x32xf32>
    %91 = vector.extract_strided_slice %88 {offsets = [0, 64], sizes = [8, 32], strides = [1, 1]} : vector<8x128xf32> to vector<8x32xf32>
    %92 = vector.extract_strided_slice %88 {offsets = [0, 96], sizes = [8, 32], strides = [1, 1]} : vector<8x128xf32> to vector<8x32xf32>
    %93 = arith.mulf %90, %50 : vector<8x32xf32>
    %94 = arith.mulf %89, %91 : vector<8x32xf32>
    %95 = arith.addf %93, %94 : vector<8x32xf32>
    %96 = math.tanh %95 : vector<8x32xf32>
    %97 = arith.mulf %92, %96 : vector<8x32xf32>
    %98 = arith.truncf %97 : vector<8x32xf32> to vector<8x32xbf16>
    %cst_42 = arith.constant dense<0.000000e+00> : vector<8x128xf32>
    %99 = tpu.matmul %98, %1, %cst_42 {dimension_numbers = #tpu.dot_dimension_numbers<[1], [0], [0], [1], [0, 0, 1, 1], [], []>} : vector<8x32xbf16>, vector<32x128xbf16>, vector<8x128xf32> -> vector<8x128xf32>
    %cst_43 = arith.constant dense<0.000000e+00> : vector<8x128xf32>
    %100 = tpu.matmul %76, %3, %cst_43 {dimension_numbers = #tpu.dot_dimension_numbers<[1], [0], [0], [1], [0, 0, 1, 1], [], []>} : vector<8x32xbf16>, vector<32x128xbf16>, vector<8x128xf32> -> vector<8x128xf32>
    %101 = arith.addf %99, %100 : vector<8x128xf32>
    %102 = vector.broadcast %5 : vector<1x128xf32> to vector<8x128xf32>
    %103 = arith.addf %101, %102 : vector<8x128xf32>
    %104 = arith.mulf %103, %14 : vector<8x128xf32>
    %105 = arith.negf %104 : vector<8x128xf32>
    %106 = math.exp %105 : vector<8x128xf32>
    %cst_44 = arith.constant 1.000000e+00 : f32
    %107 = vector.broadcast %cst_44 : f32 to vector<8x128xf32>
    %108 = arith.addf %107, %106 : vector<8x128xf32>
    %109 = arith.divf %107, %108 : vector<8x128xf32>
    %110 = arith.mulf %109, %14 : vector<8x128xf32>
    %111 = arith.addf %110, %17 : vector<8x128xf32>
    %112 = vector.extract_strided_slice %111 {offsets = [0, 0], sizes = [8, 32], strides = [1, 1]} : vector<8x128xf32> to vector<8x32xf32>
    %113 = vector.extract_strided_slice %111 {offsets = [0, 32], sizes = [8, 32], strides = [1, 1]} : vector<8x128xf32> to vector<8x32xf32>
    %114 = vector.extract_strided_slice %111 {offsets = [0, 64], sizes = [8, 32], strides = [1, 1]} : vector<8x128xf32> to vector<8x32xf32>
    %115 = vector.extract_strided_slice %111 {offsets = [0, 96], sizes = [8, 32], strides = [1, 1]} : vector<8x128xf32> to vector<8x32xf32>
    %116 = arith.mulf %113, %73 : vector<8x32xf32>
    %117 = arith.mulf %112, %114 : vector<8x32xf32>
    %118 = arith.addf %116, %117 : vector<8x32xf32>
    %119 = math.tanh %118 : vector<8x32xf32>
    %120 = arith.mulf %115, %119 : vector<8x32xf32>
    %121 = arith.truncf %120 : vector<8x32xf32> to vector<8x32xbf16>
    %c8_45 = arith.constant 8 : index
    %c0_46 = arith.constant 0 : index
    %122 = vector.load %arg15[%c8_45, %c0_46] : memref<64x32xbf16, #tpu.memory_space<vmem>>, vector<8x32xbf16>
    tpu.vector_store %arg15[%c8_45, %c0_46], %121 {strides = array<i32>} : memref<64x32xbf16, #tpu.memory_space<vmem>>, vector<8x32xbf16>,
    %c16 = arith.constant 16 : index
    %c0_47 = arith.constant 0 : index
    %123 = vector.load %arg14[%c16, %c0_47] : memref<64x128xf32, #tpu.memory_space<vmem>>, vector<8x128xf32>
    %cst_48 = arith.constant dense<0.000000e+00> : vector<8x128xf32>
    %124 = tpu.matmul %98, %2, %cst_48 {dimension_numbers = #tpu.dot_dimension_numbers<[1], [0], [0], [1], [0, 0, 1, 1], [], []>} : vector<8x32xbf16>, vector<32x128xbf16>, vector<8x128xf32> -> vector<8x128xf32>
    %125 = arith.addf %123, %124 : vector<8x128xf32>
    %126 = arith.mulf %125, %14 : vector<8x128xf32>
    %127 = arith.negf %126 : vector<8x128xf32>
    %128 = math.exp %127 : vector<8x128xf32>
    %cst_49 = arith.constant 1.000000e+00 : f32
    %129 = vector.broadcast %cst_49 : f32 to vector<8x128xf32>
    %130 = arith.addf %129, %128 : vector<8x128xf32>
    %131 = arith.divf %129, %130 : vector<8x128xf32>
    %132 = arith.mulf %131, %14 : vector<8x128xf32>
    %133 = arith.addf %132, %17 : vector<8x128xf32>
    %134 = vector.extract_strided_slice %133 {offsets = [0, 0], sizes = [8, 32], strides = [1, 1]} : vector<8x128xf32> to vector<8x32xf32>
    %135 = vector.extract_strided_slice %133 {offsets = [0, 32], sizes = [8, 32], strides = [1, 1]} : vector<8x128xf32> to vector<8x32xf32>
    %136 = vector.extract_strided_slice %133 {offsets = [0, 64], sizes = [8, 32], strides = [1, 1]} : vector<8x128xf32> to vector<8x32xf32>
    %137 = vector.extract_strided_slice %133 {offsets = [0, 96], sizes = [8, 32], strides = [1, 1]} : vector<8x128xf32> to vector<8x32xf32>
    %138 = arith.mulf %135, %95 : vector<8x32xf32>
    %139 = arith.mulf %134, %136 : vector<8x32xf32>
    %140 = arith.addf %138, %139 : vector<8x32xf32>
    %141 = math.tanh %140 : vector<8x32xf32>
    %142 = arith.mulf %137, %141 : vector<8x32xf32>
    %143 = arith.truncf %142 : vector<8x32xf32> to vector<8x32xbf16>
    %cst_50 = arith.constant dense<0.000000e+00> : vector<8x128xf32>
    %144 = tpu.matmul %143, %1, %cst_50 {dimension_numbers = #tpu.dot_dimension_numbers<[1], [0], [0], [1], [0, 0, 1, 1], [], []>} : vector<8x32xbf16>, vector<32x128xbf16>, vector<8x128xf32> -> vector<8x128xf32>
    %cst_51 = arith.constant dense<0.000000e+00> : vector<8x128xf32>
    %145 = tpu.matmul %121, %3, %cst_51 {dimension_numbers = #tpu.dot_dimension_numbers<[1], [0], [0], [1], [0, 0, 1, 1], [], []>} : vector<8x32xbf16>, vector<32x128xbf16>, vector<8x128xf32> -> vector<8x128xf32>
    %146 = arith.addf %144, %145 : vector<8x128xf32>
    %147 = vector.broadcast %5 : vector<1x128xf32> to vector<8x128xf32>
    %148 = arith.addf %146, %147 : vector<8x128xf32>
    %149 = arith.mulf %148, %14 : vector<8x128xf32>
    %150 = arith.negf %149 : vector<8x128xf32>
    %151 = math.exp %150 : vector<8x128xf32>
    %cst_52 = arith.constant 1.000000e+00 : f32
    %152 = vector.broadcast %cst_52 : f32 to vector<8x128xf32>
    %153 = arith.addf %152, %151 : vector<8x128xf32>
    %154 = arith.divf %152, %153 : vector<8x128xf32>
    %155 = arith.mulf %154, %14 : vector<8x128xf32>
    %156 = arith.addf %155, %17 : vector<8x128xf32>
    %157 = vector.extract_strided_slice %156 {offsets = [0, 0], sizes = [8, 32], strides = [1, 1]} : vector<8x128xf32> to vector<8x32xf32>
    %158 = vector.extract_strided_slice %156 {offsets = [0, 32], sizes = [8, 32], strides = [1, 1]} : vector<8x128xf32> to vector<8x32xf32>
    %159 = vector.extract_strided_slice %156 {offsets = [0, 64], sizes = [8, 32], strides = [1, 1]} : vector<8x128xf32> to vector<8x32xf32>
    %160 = vector.extract_strided_slice %156 {offsets = [0, 96], sizes = [8, 32], strides = [1, 1]} : vector<8x128xf32> to vector<8x32xf32>
    %161 = arith.mulf %158, %118 : vector<8x32xf32>
    %162 = arith.mulf %157, %159 : vector<8x32xf32>
    %163 = arith.addf %161, %162 : vector<8x32xf32>
    %164 = math.tanh %163 : vector<8x32xf32>
    %165 = arith.mulf %160, %164 : vector<8x32xf32>
    %166 = arith.truncf %165 : vector<8x32xf32> to vector<8x32xbf16>
    %c16_53 = arith.constant 16 : index
    %c0_54 = arith.constant 0 : index
    %167 = vector.load %arg15[%c16_53, %c0_54] : memref<64x32xbf16, #tpu.memory_space<vmem>>, vector<8x32xbf16>
    tpu.vector_store %arg15[%c16_53, %c0_54], %166 {strides = array<i32>} : memref<64x32xbf16, #tpu.memory_space<vmem>>, vector<8x32xbf16>,
    %c24 = arith.constant 24 : index
    %c0_55 = arith.constant 0 : index
    %168 = vector.load %arg14[%c24, %c0_55] : memref<64x128xf32, #tpu.memory_space<vmem>>, vector<8x128xf32>
    %cst_56 = arith.constant dense<0.000000e+00> : vector<8x128xf32>
    %169 = tpu.matmul %143, %2, %cst_56 {dimension_numbers = #tpu.dot_dimension_numbers<[1], [0], [0], [1], [0, 0, 1, 1], [], []>} : vector<8x32xbf16>, vector<32x128xbf16>, vector<8x128xf32> -> vector<8x128xf32>
    %170 = arith.addf %168, %169 : vector<8x128xf32>
    %171 = arith.mulf %170, %14 : vector<8x128xf32>
    %172 = arith.negf %171 : vector<8x128xf32>
    %173 = math.exp %172 : vector<8x128xf32>
    %cst_57 = arith.constant 1.000000e+00 : f32
    %174 = vector.broadcast %cst_57 : f32 to vector<8x128xf32>
    %175 = arith.addf %174, %173 : vector<8x128xf32>
    %176 = arith.divf %174, %175 : vector<8x128xf32>
    %177 = arith.mulf %176, %14 : vector<8x128xf32>
    %178 = arith.addf %177, %17 : vector<8x128xf32>
    %179 = vector.extract_strided_slice %178 {offsets = [0, 0], sizes = [8, 32], strides = [1, 1]} : vector<8x128xf32> to vector<8x32xf32>
    %180 = vector.extract_strided_slice %178 {offsets = [0, 32], sizes = [8, 32], strides = [1, 1]} : vector<8x128xf32> to vector<8x32xf32>
    %181 = vector.extract_strided_slice %178 {offsets = [0, 64], sizes = [8, 32], strides = [1, 1]} : vector<8x128xf32> to vector<8x32xf32>
    %182 = vector.extract_strided_slice %178 {offsets = [0, 96], sizes = [8, 32], strides = [1, 1]} : vector<8x128xf32> to vector<8x32xf32>
    %183 = arith.mulf %180, %140 : vector<8x32xf32>
    %184 = arith.mulf %179, %181 : vector<8x32xf32>
    %185 = arith.addf %183, %184 : vector<8x32xf32>
    %186 = math.tanh %185 : vector<8x32xf32>
    %187 = arith.mulf %182, %186 : vector<8x32xf32>
    %188 = arith.truncf %187 : vector<8x32xf32> to vector<8x32xbf16>
    %cst_58 = arith.constant dense<0.000000e+00> : vector<8x128xf32>
    %189 = tpu.matmul %188, %1, %cst_58 {dimension_numbers = #tpu.dot_dimension_numbers<[1], [0], [0], [1], [0, 0, 1, 1], [], []>} : vector<8x32xbf16>, vector<32x128xbf16>, vector<8x128xf32> -> vector<8x128xf32>
    %cst_59 = arith.constant dense<0.000000e+00> : vector<8x128xf32>
    %190 = tpu.matmul %166, %3, %cst_59 {dimension_numbers = #tpu.dot_dimension_numbers<[1], [0], [0], [1], [0, 0, 1, 1], [], []>} : vector<8x32xbf16>, vector<32x128xbf16>, vector<8x128xf32> -> vector<8x128xf32>
    %191 = arith.addf %189, %190 : vector<8x128xf32>
    %192 = vector.broadcast %5 : vector<1x128xf32> to vector<8x128xf32>
    %193 = arith.addf %191, %192 : vector<8x128xf32>
    %194 = arith.mulf %193, %14 : vector<8x128xf32>
    %195 = arith.negf %194 : vector<8x128xf32>
    %196 = math.exp %195 : vector<8x128xf32>
    %cst_60 = arith.constant 1.000000e+00 : f32
    %197 = vector.broadcast %cst_60 : f32 to vector<8x128xf32>
    %198 = arith.addf %197, %196 : vector<8x128xf32>
    %199 = arith.divf %197, %198 : vector<8x128xf32>
    %200 = arith.mulf %199, %14 : vector<8x128xf32>
    %201 = arith.addf %200, %17 : vector<8x128xf32>
    %202 = vector.extract_strided_slice %201 {offsets = [0, 0], sizes = [8, 32], strides = [1, 1]} : vector<8x128xf32> to vector<8x32xf32>
    %203 = vector.extract_strided_slice %201 {offsets = [0, 32], sizes = [8, 32], strides = [1, 1]} : vector<8x128xf32> to vector<8x32xf32>
    %204 = vector.extract_strided_slice %201 {offsets = [0, 64], sizes = [8, 32], strides = [1, 1]} : vector<8x128xf32> to vector<8x32xf32>
    %205 = vector.extract_strided_slice %201 {offsets = [0, 96], sizes = [8, 32], strides = [1, 1]} : vector<8x128xf32> to vector<8x32xf32>
    %206 = arith.mulf %203, %163 : vector<8x32xf32>
    %207 = arith.mulf %202, %204 : vector<8x32xf32>
    %208 = arith.addf %206, %207 : vector<8x32xf32>
    %209 = math.tanh %208 : vector<8x32xf32>
    %210 = arith.mulf %205, %209 : vector<8x32xf32>
    %211 = arith.truncf %210 : vector<8x32xf32> to vector<8x32xbf16>
    %c24_61 = arith.constant 24 : index
    %c0_62 = arith.constant 0 : index
    %212 = vector.load %arg15[%c24_61, %c0_62] : memref<64x32xbf16, #tpu.memory_space<vmem>>, vector<8x32xbf16>
    tpu.vector_store %arg15[%c24_61, %c0_62], %211 {strides = array<i32>} : memref<64x32xbf16, #tpu.memory_space<vmem>>, vector<8x32xbf16>,
    %c32 = arith.constant 32 : index
    %c0_63 = arith.constant 0 : index
    %213 = vector.load %arg14[%c32, %c0_63] : memref<64x128xf32, #tpu.memory_space<vmem>>, vector<8x128xf32>
    %cst_64 = arith.constant dense<0.000000e+00> : vector<8x128xf32>
    %214 = tpu.matmul %188, %2, %cst_64 {dimension_numbers = #tpu.dot_dimension_numbers<[1], [0], [0], [1], [0, 0, 1, 1], [], []>} : vector<8x32xbf16>, vector<32x128xbf16>, vector<8x128xf32> -> vector<8x128xf32>
    %215 = arith.addf %213, %214 : vector<8x128xf32>
    %216 = arith.mulf %215, %14 : vector<8x128xf32>
    %217 = arith.negf %216 : vector<8x128xf32>
    %218 = math.exp %217 : vector<8x128xf32>
    %cst_65 = arith.constant 1.000000e+00 : f32
    %219 = vector.broadcast %cst_65 : f32 to vector<8x128xf32>
    %220 = arith.addf %219, %218 : vector<8x128xf32>
    %221 = arith.divf %219, %220 : vector<8x128xf32>
    %222 = arith.mulf %221, %14 : vector<8x128xf32>
    %223 = arith.addf %222, %17 : vector<8x128xf32>
    %224 = vector.extract_strided_slice %223 {offsets = [0, 0], sizes = [8, 32], strides = [1, 1]} : vector<8x128xf32> to vector<8x32xf32>
    %225 = vector.extract_strided_slice %223 {offsets = [0, 32], sizes = [8, 32], strides = [1, 1]} : vector<8x128xf32> to vector<8x32xf32>
    %226 = vector.extract_strided_slice %223 {offsets = [0, 64], sizes = [8, 32], strides = [1, 1]} : vector<8x128xf32> to vector<8x32xf32>
    %227 = vector.extract_strided_slice %223 {offsets = [0, 96], sizes = [8, 32], strides = [1, 1]} : vector<8x128xf32> to vector<8x32xf32>
    %228 = arith.mulf %225, %185 : vector<8x32xf32>
    %229 = arith.mulf %224, %226 : vector<8x32xf32>
    %230 = arith.addf %228, %229 : vector<8x32xf32>
    %231 = math.tanh %230 : vector<8x32xf32>
    %232 = arith.mulf %227, %231 : vector<8x32xf32>
    %233 = arith.truncf %232 : vector<8x32xf32> to vector<8x32xbf16>
    %cst_66 = arith.constant dense<0.000000e+00> : vector<8x128xf32>
    %234 = tpu.matmul %233, %1, %cst_66 {dimension_numbers = #tpu.dot_dimension_numbers<[1], [0], [0], [1], [0, 0, 1, 1], [], []>} : vector<8x32xbf16>, vector<32x128xbf16>, vector<8x128xf32> -> vector<8x128xf32>
    %cst_67 = arith.constant dense<0.000000e+00> : vector<8x128xf32>
    %235 = tpu.matmul %211, %3, %cst_67 {dimension_numbers = #tpu.dot_dimension_numbers<[1], [0], [0], [1], [0, 0, 1, 1], [], []>} : vector<8x32xbf16>, vector<32x128xbf16>, vector<8x128xf32> -> vector<8x128xf32>
    %236 = arith.addf %234, %235 : vector<8x128xf32>
    %237 = vector.broadcast %5 : vector<1x128xf32> to vector<8x128xf32>
    %238 = arith.addf %236, %237 : vector<8x128xf32>
    %239 = arith.mulf %238, %14 : vector<8x128xf32>
    %240 = arith.negf %239 : vector<8x128xf32>
    %241 = math.exp %240 : vector<8x128xf32>
    %cst_68 = arith.constant 1.000000e+00 : f32
    %242 = vector.broadcast %cst_68 : f32 to vector<8x128xf32>
    %243 = arith.addf %242, %241 : vector<8x128xf32>
    %244 = arith.divf %242, %243 : vector<8x128xf32>
    %245 = arith.mulf %244, %14 : vector<8x128xf32>
    %246 = arith.addf %245, %17 : vector<8x128xf32>
    %247 = vector.extract_strided_slice %246 {offsets = [0, 0], sizes = [8, 32], strides = [1, 1]} : vector<8x128xf32> to vector<8x32xf32>
    %248 = vector.extract_strided_slice %246 {offsets = [0, 32], sizes = [8, 32], strides = [1, 1]} : vector<8x128xf32> to vector<8x32xf32>
    %249 = vector.extract_strided_slice %246 {offsets = [0, 64], sizes = [8, 32], strides = [1, 1]} : vector<8x128xf32> to vector<8x32xf32>
    %250 = vector.extract_strided_slice %246 {offsets = [0, 96], sizes = [8, 32], strides = [1, 1]} : vector<8x128xf32> to vector<8x32xf32>
    %251 = arith.mulf %248, %208 : vector<8x32xf32>
    %252 = arith.mulf %247, %249 : vector<8x32xf32>
    %253 = arith.addf %251, %252 : vector<8x32xf32>
    %254 = math.tanh %253 : vector<8x32xf32>
    %255 = arith.mulf %250, %254 : vector<8x32xf32>
    %256 = arith.truncf %255 : vector<8x32xf32> to vector<8x32xbf16>
    %c32_69 = arith.constant 32 : index
    %c0_70 = arith.constant 0 : index
    %257 = vector.load %arg15[%c32_69, %c0_70] : memref<64x32xbf16, #tpu.memory_space<vmem>>, vector<8x32xbf16>
    tpu.vector_store %arg15[%c32_69, %c0_70], %256 {strides = array<i32>} : memref<64x32xbf16, #tpu.memory_space<vmem>>, vector<8x32xbf16>,
    %c40 = arith.constant 40 : index
    %c0_71 = arith.constant 0 : index
    %258 = vector.load %arg14[%c40, %c0_71] : memref<64x128xf32, #tpu.memory_space<vmem>>, vector<8x128xf32>
    %cst_72 = arith.constant dense<0.000000e+00> : vector<8x128xf32>
    %259 = tpu.matmul %233, %2, %cst_72 {dimension_numbers = #tpu.dot_dimension_numbers<[1], [0], [0], [1], [0, 0, 1, 1], [], []>} : vector<8x32xbf16>, vector<32x128xbf16>, vector<8x128xf32> -> vector<8x128xf32>
    %260 = arith.addf %258, %259 : vector<8x128xf32>
    %261 = arith.mulf %260, %14 : vector<8x128xf32>
    %262 = arith.negf %261 : vector<8x128xf32>
    %263 = math.exp %262 : vector<8x128xf32>
    %cst_73 = arith.constant 1.000000e+00 : f32
    %264 = vector.broadcast %cst_73 : f32 to vector<8x128xf32>
    %265 = arith.addf %264, %263 : vector<8x128xf32>
    %266 = arith.divf %264, %265 : vector<8x128xf32>
    %267 = arith.mulf %266, %14 : vector<8x128xf32>
    %268 = arith.addf %267, %17 : vector<8x128xf32>
    %269 = vector.extract_strided_slice %268 {offsets = [0, 0], sizes = [8, 32], strides = [1, 1]} : vector<8x128xf32> to vector<8x32xf32>
    %270 = vector.extract_strided_slice %268 {offsets = [0, 32], sizes = [8, 32], strides = [1, 1]} : vector<8x128xf32> to vector<8x32xf32>
    %271 = vector.extract_strided_slice %268 {offsets = [0, 64], sizes = [8, 32], strides = [1, 1]} : vector<8x128xf32> to vector<8x32xf32>
    %272 = vector.extract_strided_slice %268 {offsets = [0, 96], sizes = [8, 32], strides = [1, 1]} : vector<8x128xf32> to vector<8x32xf32>
    %273 = arith.mulf %270, %230 : vector<8x32xf32>
    %274 = arith.mulf %269, %271 : vector<8x32xf32>
    %275 = arith.addf %273, %274 : vector<8x32xf32>
    %276 = math.tanh %275 : vector<8x32xf32>
    %277 = arith.mulf %272, %276 : vector<8x32xf32>
    %278 = arith.truncf %277 : vector<8x32xf32> to vector<8x32xbf16>
    %cst_74 = arith.constant dense<0.000000e+00> : vector<8x128xf32>
    %279 = tpu.matmul %278, %1, %cst_74 {dimension_numbers = #tpu.dot_dimension_numbers<[1], [0], [0], [1], [0, 0, 1, 1], [], []>} : vector<8x32xbf16>, vector<32x128xbf16>, vector<8x128xf32> -> vector<8x128xf32>
    %cst_75 = arith.constant dense<0.000000e+00> : vector<8x128xf32>
    %280 = tpu.matmul %256, %3, %cst_75 {dimension_numbers = #tpu.dot_dimension_numbers<[1], [0], [0], [1], [0, 0, 1, 1], [], []>} : vector<8x32xbf16>, vector<32x128xbf16>, vector<8x128xf32> -> vector<8x128xf32>
    %281 = arith.addf %279, %280 : vector<8x128xf32>
    %282 = vector.broadcast %5 : vector<1x128xf32> to vector<8x128xf32>
    %283 = arith.addf %281, %282 : vector<8x128xf32>
    %284 = arith.mulf %283, %14 : vector<8x128xf32>
    %285 = arith.negf %284 : vector<8x128xf32>
    %286 = math.exp %285 : vector<8x128xf32>
    %cst_76 = arith.constant 1.000000e+00 : f32
    %287 = vector.broadcast %cst_76 : f32 to vector<8x128xf32>
    %288 = arith.addf %287, %286 : vector<8x128xf32>
    %289 = arith.divf %287, %288 : vector<8x128xf32>
    %290 = arith.mulf %289, %14 : vector<8x128xf32>
    %291 = arith.addf %290, %17 : vector<8x128xf32>
    %292 = vector.extract_strided_slice %291 {offsets = [0, 0], sizes = [8, 32], strides = [1, 1]} : vector<8x128xf32> to vector<8x32xf32>
    %293 = vector.extract_strided_slice %291 {offsets = [0, 32], sizes = [8, 32], strides = [1, 1]} : vector<8x128xf32> to vector<8x32xf32>
    %294 = vector.extract_strided_slice %291 {offsets = [0, 64], sizes = [8, 32], strides = [1, 1]} : vector<8x128xf32> to vector<8x32xf32>
    %295 = vector.extract_strided_slice %291 {offsets = [0, 96], sizes = [8, 32], strides = [1, 1]} : vector<8x128xf32> to vector<8x32xf32>
    %296 = arith.mulf %293, %253 : vector<8x32xf32>
    %297 = arith.mulf %292, %294 : vector<8x32xf32>
    %298 = arith.addf %296, %297 : vector<8x32xf32>
    %299 = math.tanh %298 : vector<8x32xf32>
    %300 = arith.mulf %295, %299 : vector<8x32xf32>
    %301 = arith.truncf %300 : vector<8x32xf32> to vector<8x32xbf16>
    %c40_77 = arith.constant 40 : index
    %c0_78 = arith.constant 0 : index
    %302 = vector.load %arg15[%c40_77, %c0_78] : memref<64x32xbf16, #tpu.memory_space<vmem>>, vector<8x32xbf16>
    tpu.vector_store %arg15[%c40_77, %c0_78], %301 {strides = array<i32>} : memref<64x32xbf16, #tpu.memory_space<vmem>>, vector<8x32xbf16>,
    %c48 = arith.constant 48 : index
    %c0_79 = arith.constant 0 : index
    %303 = vector.load %arg14[%c48, %c0_79] : memref<64x128xf32, #tpu.memory_space<vmem>>, vector<8x128xf32>
    %cst_80 = arith.constant dense<0.000000e+00> : vector<8x128xf32>
    %304 = tpu.matmul %278, %2, %cst_80 {dimension_numbers = #tpu.dot_dimension_numbers<[1], [0], [0], [1], [0, 0, 1, 1], [], []>} : vector<8x32xbf16>, vector<32x128xbf16>, vector<8x128xf32> -> vector<8x128xf32>
    %305 = arith.addf %303, %304 : vector<8x128xf32>
    %306 = arith.mulf %305, %14 : vector<8x128xf32>
    %307 = arith.negf %306 : vector<8x128xf32>
    %308 = math.exp %307 : vector<8x128xf32>
    %cst_81 = arith.constant 1.000000e+00 : f32
    %309 = vector.broadcast %cst_81 : f32 to vector<8x128xf32>
    %310 = arith.addf %309, %308 : vector<8x128xf32>
    %311 = arith.divf %309, %310 : vector<8x128xf32>
    %312 = arith.mulf %311, %14 : vector<8x128xf32>
    %313 = arith.addf %312, %17 : vector<8x128xf32>
    %314 = vector.extract_strided_slice %313 {offsets = [0, 0], sizes = [8, 32], strides = [1, 1]} : vector<8x128xf32> to vector<8x32xf32>
    %315 = vector.extract_strided_slice %313 {offsets = [0, 32], sizes = [8, 32], strides = [1, 1]} : vector<8x128xf32> to vector<8x32xf32>
    %316 = vector.extract_strided_slice %313 {offsets = [0, 64], sizes = [8, 32], strides = [1, 1]} : vector<8x128xf32> to vector<8x32xf32>
    %317 = vector.extract_strided_slice %313 {offsets = [0, 96], sizes = [8, 32], strides = [1, 1]} : vector<8x128xf32> to vector<8x32xf32>
    %318 = arith.mulf %315, %275 : vector<8x32xf32>
    %319 = arith.mulf %314, %316 : vector<8x32xf32>
    %320 = arith.addf %318, %319 : vector<8x32xf32>
    %321 = math.tanh %320 : vector<8x32xf32>
    %322 = arith.mulf %317, %321 : vector<8x32xf32>
    %323 = arith.truncf %322 : vector<8x32xf32> to vector<8x32xbf16>
    %cst_82 = arith.constant dense<0.000000e+00> : vector<8x128xf32>
    %324 = tpu.matmul %323, %1, %cst_82 {dimension_numbers = #tpu.dot_dimension_numbers<[1], [0], [0], [1], [0, 0, 1, 1], [], []>} : vector<8x32xbf16>, vector<32x128xbf16>, vector<8x128xf32> -> vector<8x128xf32>
    %cst_83 = arith.constant dense<0.000000e+00> : vector<8x128xf32>
    %325 = tpu.matmul %301, %3, %cst_83 {dimension_numbers = #tpu.dot_dimension_numbers<[1], [0], [0], [1], [0, 0, 1, 1], [], []>} : vector<8x32xbf16>, vector<32x128xbf16>, vector<8x128xf32> -> vector<8x128xf32>
    %326 = arith.addf %324, %325 : vector<8x128xf32>
    %327 = vector.broadcast %5 : vector<1x128xf32> to vector<8x128xf32>
    %328 = arith.addf %326, %327 : vector<8x128xf32>
    %329 = arith.mulf %328, %14 : vector<8x128xf32>
    %330 = arith.negf %329 : vector<8x128xf32>
    %331 = math.exp %330 : vector<8x128xf32>
    %cst_84 = arith.constant 1.000000e+00 : f32
    %332 = vector.broadcast %cst_84 : f32 to vector<8x128xf32>
    %333 = arith.addf %332, %331 : vector<8x128xf32>
    %334 = arith.divf %332, %333 : vector<8x128xf32>
    %335 = arith.mulf %334, %14 : vector<8x128xf32>
    %336 = arith.addf %335, %17 : vector<8x128xf32>
    %337 = vector.extract_strided_slice %336 {offsets = [0, 0], sizes = [8, 32], strides = [1, 1]} : vector<8x128xf32> to vector<8x32xf32>
    %338 = vector.extract_strided_slice %336 {offsets = [0, 32], sizes = [8, 32], strides = [1, 1]} : vector<8x128xf32> to vector<8x32xf32>
    %339 = vector.extract_strided_slice %336 {offsets = [0, 64], sizes = [8, 32], strides = [1, 1]} : vector<8x128xf32> to vector<8x32xf32>
    %340 = vector.extract_strided_slice %336 {offsets = [0, 96], sizes = [8, 32], strides = [1, 1]} : vector<8x128xf32> to vector<8x32xf32>
    %341 = arith.mulf %338, %298 : vector<8x32xf32>
    %342 = arith.mulf %337, %339 : vector<8x32xf32>
    %343 = arith.addf %341, %342 : vector<8x32xf32>
    %344 = math.tanh %343 : vector<8x32xf32>
    %345 = arith.mulf %340, %344 : vector<8x32xf32>
    %346 = arith.truncf %345 : vector<8x32xf32> to vector<8x32xbf16>
    %c48_85 = arith.constant 48 : index
    %c0_86 = arith.constant 0 : index
    %347 = vector.load %arg15[%c48_85, %c0_86] : memref<64x32xbf16, #tpu.memory_space<vmem>>, vector<8x32xbf16>
    tpu.vector_store %arg15[%c48_85, %c0_86], %346 {strides = array<i32>} : memref<64x32xbf16, #tpu.memory_space<vmem>>, vector<8x32xbf16>,
    %c56 = arith.constant 56 : index
    %c0_87 = arith.constant 0 : index
    %348 = vector.load %arg14[%c56, %c0_87] : memref<64x128xf32, #tpu.memory_space<vmem>>, vector<8x128xf32>
    %cst_88 = arith.constant dense<0.000000e+00> : vector<8x128xf32>
    %349 = tpu.matmul %323, %2, %cst_88 {dimension_numbers = #tpu.dot_dimension_numbers<[1], [0], [0], [1], [0, 0, 1, 1], [], []>} : vector<8x32xbf16>, vector<32x128xbf16>, vector<8x128xf32> -> vector<8x128xf32>
    %350 = arith.addf %348, %349 : vector<8x128xf32>
    %351 = arith.mulf %350, %14 : vector<8x128xf32>
    %352 = arith.negf %351 : vector<8x128xf32>
    %353 = math.exp %352 : vector<8x128xf32>
    %cst_89 = arith.constant 1.000000e+00 : f32
    %354 = vector.broadcast %cst_89 : f32 to vector<8x128xf32>
    %355 = arith.addf %354, %353 : vector<8x128xf32>
    %356 = arith.divf %354, %355 : vector<8x128xf32>
    %357 = arith.mulf %356, %14 : vector<8x128xf32>
    %358 = arith.addf %357, %17 : vector<8x128xf32>
    %359 = vector.extract_strided_slice %358 {offsets = [0, 0], sizes = [8, 32], strides = [1, 1]} : vector<8x128xf32> to vector<8x32xf32>
    %360 = vector.extract_strided_slice %358 {offsets = [0, 32], sizes = [8, 32], strides = [1, 1]} : vector<8x128xf32> to vector<8x32xf32>
    %361 = vector.extract_strided_slice %358 {offsets = [0, 64], sizes = [8, 32], strides = [1, 1]} : vector<8x128xf32> to vector<8x32xf32>
    %362 = vector.extract_strided_slice %358 {offsets = [0, 96], sizes = [8, 32], strides = [1, 1]} : vector<8x128xf32> to vector<8x32xf32>
    %363 = arith.mulf %360, %320 : vector<8x32xf32>
    %364 = arith.mulf %359, %361 : vector<8x32xf32>
    %365 = arith.addf %363, %364 : vector<8x32xf32>
    %366 = math.tanh %365 : vector<8x32xf32>
    %367 = arith.mulf %362, %366 : vector<8x32xf32>
    %368 = arith.truncf %367 : vector<8x32xf32> to vector<8x32xbf16>
    %cst_90 = arith.constant dense<0.000000e+00> : vector<8x128xf32>
    %369 = tpu.matmul %368, %1, %cst_90 {dimension_numbers = #tpu.dot_dimension_numbers<[1], [0], [0], [1], [0, 0, 1, 1], [], []>} : vector<8x32xbf16>, vector<32x128xbf16>, vector<8x128xf32> -> vector<8x128xf32>
    %cst_91 = arith.constant dense<0.000000e+00> : vector<8x128xf32>
    %370 = tpu.matmul %346, %3, %cst_91 {dimension_numbers = #tpu.dot_dimension_numbers<[1], [0], [0], [1], [0, 0, 1, 1], [], []>} : vector<8x32xbf16>, vector<32x128xbf16>, vector<8x128xf32> -> vector<8x128xf32>
    %371 = arith.addf %369, %370 : vector<8x128xf32>
    %372 = vector.broadcast %5 : vector<1x128xf32> to vector<8x128xf32>
    %373 = arith.addf %371, %372 : vector<8x128xf32>
    %374 = arith.mulf %373, %14 : vector<8x128xf32>
    %375 = arith.negf %374 : vector<8x128xf32>
    %376 = math.exp %375 : vector<8x128xf32>
    %cst_92 = arith.constant 1.000000e+00 : f32
    %377 = vector.broadcast %cst_92 : f32 to vector<8x128xf32>
    %378 = arith.addf %377, %376 : vector<8x128xf32>
    %379 = arith.divf %377, %378 : vector<8x128xf32>
    %380 = arith.mulf %379, %14 : vector<8x128xf32>
    %381 = arith.addf %380, %17 : vector<8x128xf32>
    %382 = vector.extract_strided_slice %381 {offsets = [0, 0], sizes = [8, 32], strides = [1, 1]} : vector<8x128xf32> to vector<8x32xf32>
    %383 = vector.extract_strided_slice %381 {offsets = [0, 32], sizes = [8, 32], strides = [1, 1]} : vector<8x128xf32> to vector<8x32xf32>
    %384 = vector.extract_strided_slice %381 {offsets = [0, 64], sizes = [8, 32], strides = [1, 1]} : vector<8x128xf32> to vector<8x32xf32>
    %385 = vector.extract_strided_slice %381 {offsets = [0, 96], sizes = [8, 32], strides = [1, 1]} : vector<8x128xf32> to vector<8x32xf32>
    %386 = arith.mulf %383, %343 : vector<8x32xf32>
    %387 = arith.mulf %382, %384 : vector<8x32xf32>
    %388 = arith.addf %386, %387 : vector<8x32xf32>
    %389 = math.tanh %388 : vector<8x32xf32>
    %390 = arith.mulf %385, %389 : vector<8x32xf32>
    %391 = arith.truncf %390 : vector<8x32xf32> to vector<8x32xbf16>
    %c56_93 = arith.constant 56 : index
    %c0_94 = arith.constant 0 : index
    %392 = vector.load %arg15[%c56_93, %c0_94] : memref<64x32xbf16, #tpu.memory_space<vmem>>, vector<8x32xbf16>
    tpu.vector_store %arg15[%c56_93, %c0_94], %391 {strides = array<i32>} : memref<64x32xbf16, #tpu.memory_space<vmem>>, vector<8x32xbf16>,
    %c0_95 = arith.constant 0 : index
    %c0_96 = arith.constant 0 : index
    %c0_97 = arith.constant 0 : index
    %393 = vector.load %arg12[%c0_95, %c0_96, %c0_97] : memref<2x8x32xf32, #tpu.memory_space<vmem>>, vector<1x8x32xf32>
    %394 = vector.shape_cast %393 : vector<1x8x32xf32> to vector<8x32xf32>
    %395 = vector.shape_cast %367 : vector<8x32xf32> to vector<1x8x32xf32>
    tpu.vector_store %arg12[%c0_95, %c0_96, %c0_97], %395 {strides = array<i32>} : memref<2x8x32xf32, #tpu.memory_space<vmem>>, vector<1x8x32xf32>,
    %c0_98 = arith.constant 0 : index
    %c0_99 = arith.constant 0 : index
    %c0_100 = arith.constant 0 : index
    %396 = vector.load %arg13[%c0_98, %c0_99, %c0_100] : memref<2x8x32xf32, #tpu.memory_space<vmem>>, vector<1x8x32xf32>
    %397 = vector.shape_cast %396 : vector<1x8x32xf32> to vector<8x32xf32>
    %398 = vector.shape_cast %365 : vector<8x32xf32> to vector<1x8x32xf32>
    tpu.vector_store %arg13[%c0_98, %c0_99, %c0_100], %398 {strides = array<i32>} : memref<2x8x32xf32, #tpu.memory_space<vmem>>, vector<1x8x32xf32>,
    %c1_101 = arith.constant 1 : index
    %c0_102 = arith.constant 0 : index
    %c0_103 = arith.constant 0 : index
    %399 = vector.load %arg12[%c1_101, %c0_102, %c0_103] : memref<2x8x32xf32, #tpu.memory_space<vmem>>, vector<1x8x32xf32>
    %400 = vector.shape_cast %399 : vector<1x8x32xf32> to vector<8x32xf32>
    %401 = vector.shape_cast %390 : vector<8x32xf32> to vector<1x8x32xf32>
    tpu.vector_store %arg12[%c1_101, %c0_102, %c0_103], %401 {strides = array<i32>} : memref<2x8x32xf32, #tpu.memory_space<vmem>>, vector<1x8x32xf32>,
    %c1_104 = arith.constant 1 : index
    %c0_105 = arith.constant 0 : index
    %c0_106 = arith.constant 0 : index
    %402 = vector.load %arg13[%c1_104, %c0_105, %c0_106] : memref<2x8x32xf32, #tpu.memory_space<vmem>>, vector<1x8x32xf32>
    %403 = vector.shape_cast %402 : vector<1x8x32xf32> to vector<8x32xf32>
    %404 = vector.shape_cast %388 : vector<8x32xf32> to vector<1x8x32xf32>
    tpu.vector_store %arg13[%c1_104, %c0_105, %c0_106], %404 {strides = array<i32>} : memref<2x8x32xf32, #tpu.memory_space<vmem>>, vector<1x8x32xf32>,
    %c0_107 = arith.constant 0 : index
    %c0_108 = arith.constant 0 : index
    %405 = vector.load %arg15[%c0_107, %c0_108] : memref<64x32xbf16, #tpu.memory_space<vmem>>, vector<64x32xbf16>
    %c0_109 = arith.constant 0 : index
    %c0_110 = arith.constant 0 : index
    %406 = vector.load %arg7[%c0_109, %c0_110] : memref<32x128xbf16, #tpu.memory_space<vmem>>, vector<32x128xbf16>
    %cst_111 = arith.constant dense<0.000000e+00> : vector<64x128xf32>
    %407 = tpu.matmul %405, %406, %cst_111 {dimension_numbers = #tpu.dot_dimension_numbers<[1], [0], [0], [1], [0, 0, 1, 1], [], []>} : vector<64x32xbf16>, vector<32x128xbf16>, vector<64x128xf32> -> vector<64x128xf32>
    %c0_112 = arith.constant 0 : index
    %c0_113 = arith.constant 0 : index
    %408 = vector.load %arg8[%c0_112, %c0_113] : memref<1x128xf32, #tpu.memory_space<vmem>>, vector<1x128xf32>
    %409 = vector.broadcast %408 : vector<1x128xf32> to vector<64x128xf32>
    %410 = arith.addf %407, %409 : vector<64x128xf32>
    %c0_114 = arith.constant 0 : index
    %c0_115 = arith.constant 0 : index
    %411 = vector.load %arg11[%c0_114, %c0_115] : memref<64x128xf32, #tpu.memory_space<vmem>>, vector<64x128xf32>
    tpu.vector_store %arg11[%c0_114, %c0_115], %410 {strides = array<i32>} : memref<64x128xf32, #tpu.memory_space<vmem>>, vector<64x128xf32>,
    return
  }
}

</mosaic_0001>

<bundles_post_ra>
// kernel: char_rnn_forward.1
= control target key start
LH: loop header
LB: loop body
LE: loop exit
PB: predicated region body
PF: predicated region fallthrough
CT: control target
= control target key end

     0   :  { %vm110_vm0 = vcmask 261120   ;;  %v60_v9 = vlaneseq  ;;  %v1720_v16 = vmov 1.0   ;;  %v1721_v34 = vmov 0.0   ;;  %s1722_s22 = smov 64   ;;  %s1723_s25 = smov 32   ;;  %s2265_s1 = inlined_call_operand.vmem [shape: bf16[32,128], index: 1, kind: input, shape index: {}]   ;;  %s2266_s2 = inlined_call_operand.vmem [shape: bf16[32,128], index: 2, kind: input, shape index: {}]   ;;  %s2267_s3 = inlined_call_operand.vmem [shape: f32[1,128], index: 3, kind: input, shape index: {}]   ;;  %s2268_s0 = inlined_call_operand.vmem [shape: bf16[64,32], index: 0, kind: input, shape index: {}]   ;;  %s2269_s9 = inlined_call_operand.vmem [shape: f32[2,8,32], index: 9, kind: input, shape index: {}]   ;;  %s2270_s10 = inlined_call_operand.vmem [shape: f32[2,8,32], index: 10, kind: input, shape index: {}]   ;;  %s2271_s5 = inlined_call_operand.vmem [shape: bf16[32,128], index: 5, kind: input, shape index: {}]   ;;  %s2272_s4 = inlined_call_operand.vmem [shape: bf16[32,128], index: 4, kind: input, shape index: {}]   ;;  %s2273_s6 = inlined_call_operand.vmem [shape: f32[1,128], index: 6, kind: input, shape index: {}]   ;;  %s2274_s12 = inlined_call_operand.vmem [shape: f32[2,8,32], index: 12, kind: output, shape index: {1}]   ;;  %s2275_s7 = inlined_call_operand.vmem [shape: bf16[32,128], index: 7, kind: input, shape index: {}]   ;;  %s2276_s8 = inlined_call_operand.vmem [shape: f32[1,128], index: 8, kind: input, shape index: {}]   ;;  %s2277_s13 = inlined_call_operand.vmem [shape: f32[2,8,32], index: 13, kind: output, shape index: {2}]   ;;  %s2278_s11 = inlined_call_operand.vmem [shape: f32[64,128], index: 11, kind: output, shape index: {0}]  }
   0x1   :  { %v1591_v0 = vld [vmem:[%s2265_s1 + $0x8] sm:$0xff]  ;;  %v1590_v1 = vld [vmem:[%s2265_s1] sm:$0xff]  ;;  %v1600_v47 = vld [vmem:[%s2268_s0 + $0x10] sm:$0xff]  ;;  %s1724_s26 = smov 96  }
   0x2   :  { %1608 = vmatpush.bf16.msra.mxu1 %v1591_v0  ;;  %129 = vmatpush.bf16.msra.mxu0 %v1591_v0  ;;  %v1804_v2 = vld [vmem:[%s2266_s2 + $0x8] sm:$0xff]  ;;  %v1598_v4 = vld [vmem:[%s2268_s0] sm:$0xff]  ;;  %v61_v10 = vand.u32 127, %v60_v9  ;;  %v1601_v48 = vld [vmem:[%s2268_s0 + $0x18] sm:$0xff] }
   0x3   :  { %1609 = vmatpush.bf16.msra.mxu2 %v1591_v0  ;;  %1610 = vmatpush.bf16.msra.mxu3 %v1591_v0  ;;  %v1599_v3 = vld [vmem:[%s2268_s0 + $0x8] sm:$0xff]  ;;  %v1816_v5 = vld [vmem:[%s2266_s2] sm:$0xff] }
   0x4   :  { %v160_v6 = vld [vmem:[%s2269_s9] sm:$0xff]  ;;  %vm62_vm1 = vcmp.ge.s32.totalorder %v61_v10, 64  ;;  %vm63_vm2 = vcmp.lt.s32.totalorder %v61_v10, 96  ;;  %v1875_v49 = vld [vmem:[%s2271_s5 + $0x8] sm:$0xff] }
   0x5   :  { %v166_v7 = vpack.c.bf16 %v160_v6, %v160_v6  ;;  %v1838_v12 = vld [vmem:[%s2267_s3] ss:$0 sm:$0xff]  ;;  %vm1841_vm3 = vmand %vm62_vm1, %vm63_vm2  ;;  %v1880_v50 = vld [vmem:[%s2272_s4 + $0x8] sm:$0xff] }
   0x6   :  { %1611 = vmatpush.bf16.msra.mxu1 %v1590_v1  ;;  %130 = vmatpush.bf16.msra.mxu0 %v1590_v1  ;;  %v1847_v17 = vsel %vm1841_vm3, 2.0, %v1720_v16  ;;  %v1852_v35 = vsel %vm1841_vm3, -1.0, %v1721_v34  ;;  %v163_v39 = vld [vmem:[%s2270_s10] sm:$0xff]  ;;  %v1494_v56 = vld [vmem:[%s2269_s9 + $0x8] sm:$0xff] }
   0x7   :  { %1612 = vmatpush.bf16.msra.mxu2 %v1590_v1  ;;  %1613 = vmatpush.bf16.msra.mxu3 %v1590_v1  ;;  %v1889_v51 = vld [vmem:[%s2271_s5] sm:$0xff]  ;;  %v167_v57 = vpack.c.bf16 %v1494_v56, %v1494_v56  ;;  %v1495_v58 = vld [vmem:[%s2270_s10 + $0x8] sm:$0xff] }
   0x8   :  { %v1894_v52 = vld [vmem:[%s2272_s4] sm:$0xff] }
   0x9   :  { %1491 = vmatmul.msk.bf16.vlgmr.msra.gmra.mxu1 %vm110_vm0, %v1599_v3  ;;  %1490 = vmatmul.msk.bf16.vlgmr.msra.gmra.mxu0 %vm110_vm0, %v1598_v4 }
   0xa   :  { %190 = vmatpush.bf16.msrb.mxu1 %v1804_v2  ;;  %782 = vmatpush.bf16.msrb.mxu0 %v1804_v2 }
   0xb   :  { %1492 = vmatmul.msk.bf16.vlgmr.msra.gmra.mxu2 %vm110_vm0, %v1600_v47  ;;  %1493 = vmatmul.msk.bf16.vlgmr.msra.gmra.mxu3 %vm110_vm0, %v1601_v48 }
   0xc   :  { %263 = vmatpush.bf16.msrb.mxu2 %v1875_v49  ;;  %294 = vmatpush.bf16.msrb.mxu3 %v1880_v50 }
   0xe   :  { %191 = vmatpush.bf16.msrb.mxu1 %v1816_v5  ;;  %783 = vmatpush.bf16.msrb.mxu0 %v1816_v5 }
  0x10   :  { %264 = vmatpush.bf16.msrb.mxu2 %v1889_v51  ;;  %295 = vmatpush.bf16.msrb.mxu3 %v1894_v52 }
  0x12   :  { %362 = vmatpush.bf16.msra.mxu1 %v1804_v2  ;;  %983 = vmatpush.bf16.msra.mxu0 %v1875_v49 }
  0x14   :  { %423 = vmatpush.bf16.msra.mxu2 %v1875_v49  ;;  %442 = vmatpush.bf16.msra.mxu3 %v1880_v50 }
  0x16   :  { %363 = vmatpush.bf16.msra.mxu1 %v1816_v5  ;;  %984 = vmatpush.bf16.msra.mxu0 %v1889_v51 }
  0x18   :  { %424 = vmatpush.bf16.msra.mxu2 %v1889_v51  ;;  %443 = vmatpush.bf16.msra.mxu3 %v1894_v52 }
  0x19   :  { %1504 = vmatmul.msk.bf16.vlgmr.msrb.gmra.mxu1 %vm110_vm0, %v166_v7 }
  0x1a   :  { %502 = vmatpush.bf16.msrb.mxu1 %v1804_v2 }
  0x1b   :  { %1514 = vmatmul.msk.bf16.vlgmr.msrb.gmra.mxu2 %vm110_vm0, %v167_v57 }
  0x1c   :  { %563 = vmatpush.bf16.msrb.mxu2 %v1875_v49 }
  0x1e   :  { %503 = vmatpush.bf16.msrb.mxu1 %v1816_v5 }
  0x20   :  { %564 = vmatpush.bf16.msrb.mxu2 %v1889_v51 }
  0x86   :  { %v1831_v8 = vpop.f32.mrf.mxu1  ;;  %v132_v13 = vpop.f32.mrf.mxu0 }
  0x87   :  { %v133_v14 = vadd.f32 %v1838_v12, %v132_v13  ;;  %v1934_v13 = vld [vmem:[%s2273_s6] ss:$0 sm:$0xff] }
  0x8e   :  { %v1833_v11 = vpop.f32.mrf.mxu1  ;;  %v1921_v60 = vpop.f32.mrf.mxu2 }
  0x8f   :  { %v1925_v0 = vpop.f32.mrf.mxu3  ;;  %v134_v1 = vpop.f32.mrf.mxu0 }
  0x90   :  { %v135_v4 = vadd.f32 %v1838_v12, %v134_v1 }
  0x96   :  { %v193_v18 = vpop.f32.mrf.mxu1  ;;  %v1923_v61 = vpop.f32.mrf.mxu2 }
  0x97   :  { %v197_v19 = vadd.f32 %v193_v18, %v133_v14  ;;  %v1927_v3 = vpop.f32.mrf.mxu3 }
  0x99   :  { %v198_v20 = vmul.f32 %v197_v19, %v1847_v17 }
  0x9b   :  { %v1505_v21 = vmul.f32 -1.442695, %v198_v20 }
  0x9d   :  { %1622 = vpow2.f32 %v1505_v21 }
  0x9e   :  { %v195_v22 = vpop.f32.mrf.mxu1  ;;  %v266_v62 = vpop.f32.mrf.mxu2 }
  0xa3   :  { %v1623_v23 = vpop.eup %1622 }
  0xa4   :  { %v202_v24 = vadd.f32 1.0, %v1623_v23 }
  0xa6   :  { %1624 = vrcp.f32 %v202_v24  ;;  %v214_v28 = vand.u32 2147483648, %v202_v24  ;;  %v212_v30 = vand.u32 2147483647, %v202_v24  ;;  %vm208_vm5 = vweird.f32 %v202_v24  ;;  %v268_v63 = vpop.f32.mrf.mxu2 }
  0xa8   :  { %v215_v32 = vor.u32 1.1754944e-38, %v214_v28  ;;  %vm213_vm7 = vcmp.eq.f32.partialorder %v212_v30, 8.507059e+37 }
  0xac   :  { %v1625_v25 = vpop.eup %1624 }
  0xad   :  { %v204_v26 = vmul.f32 %v1625_v25, %v202_v24  ;;  %vm209_vm4 = vweird.f32 %v1625_v25 }
  0xae   :  { %vm210_vm6 = vmor %vm208_vm5, %vm209_vm4 }
  0xaf   :  { %v205_v27 = vsub.f32 1.0, %v204_v26 }
  0xb1   :  { %v206_v29 = vmul.f32 %v1625_v25, %v205_v27 }
  0xb3   :  { %v207_v31 = vadd.f32 %v1625_v25, %v206_v29 }
  0xb5   :  { %v211_v33 = vsel %vm210_vm6, %v1625_v25, %v207_v31 }
  0xb6   :  { %v216_v36 = vsel %vm213_vm7, %v215_v32, %v211_v33 }
  0xb7   :  { %v218_v37 = vmul.f32 %v216_v36, %v1847_v17 }
  0xb9   :  { %v219_v38 = vadd.f32 %v218_v37, %v1852_v35 }
  0xbb   :  { %226 = vrot.lane.b32.xlu0 %v219_v38, %s1722_s22 }
  0xc3   :  { %221 = vrot.lane.b32.xlu0 %v163_v39, %s1723_s25 }
 0x12d   :  { %v227_v40 = vpop.permute.xlu0 %226 }
 0x12e   :  { %v229_v41 = vmul.f32 %v227_v40, %v219_v38 }
 0x130   :  { %231 = vrot.lane.b32.xlu1 %v229_v41, %s1723_s25 }
 0x135   :  { %v222_v42 = vpop.permute.xlu0 %221 }
 0x136   :  { %v224_v43 = vmul.f32 %v222_v42, %v219_v38 }
 0x1a2   :  { %v232_v44 = vpop.permute.xlu1 %231 }
 0x1a3   :  { %v1862_v45 = vadd.f32 %v232_v44, %v224_v43 }
 0x1a5   :  { %1626 = vtanh.f32 %v1862_v45 }
 0x1ab   :  { %v1627_v46 = vpop.eup %1626 }
 0x1ac   :  { %237 = vrot.lane.b32.xlu1 %v1627_v46, %s1722_s22 }
 0x1b4   :  { %328 = vrot.lane.b32.xlu1 %v1495_v58, %s1723_s25 }
 0x21e   :  { %v238_v53 = vpop.permute.xlu1 %237 }
 0x21f   :  { %v240_v54 = vmul.f32 %v238_v53, %v219_v38 }
 0x221   :  { %v241_v55 = vpack.c.bf16 %v240_v54, %v240_v54 }
 0x223   :  { %271 = vrot.lane.b32.xlu2 %v241_v55, %s1723_s25 }
 0x27d   :  { %v272_v59 = vpop.permute.xlu2 %271 }
 0x27e   :  { %1523 = vmatmul.msk.bf16.vlgmr.msrb.gmra.mxu3 %vm110_vm0, %v272_v59  ;;  %1525 = vmatmul.msk.bf16.vlgmr.msra.gmra.mxu1 %vm110_vm0, %v272_v59 }
 0x27f   :  { %582 = vmatpush.bf16.msrb.mxu3 %v1880_v50  ;;  %642 = vmatpush.bf16.msra.mxu1 %v1804_v2 }
 0x283   :  { %583 = vmatpush.bf16.msrb.mxu3 %v1894_v52  ;;  %643 = vmatpush.bf16.msra.mxu1 %v1816_v5 }
 0x2fb   :  { %v365_v6 = vpop.f32.mrf.mxu1 }
 0x2fc   :  { %v369_v7 = vadd.f32 %v365_v6, %v135_v4 }
 0x2fe   :  { %v370_v9 = vmul.f32 %v369_v7, %v1847_v17 }
 0x300   :  { %v1526_v10 = vmul.f32 -1.442695, %v370_v9 }
 0x301   :  { %v297_v14 = vpop.f32.mrf.mxu3 }
 0x302   :  { %1628 = vpow2.f32 %v1526_v10  ;;  %v298_v15 = vadd.f32 %v297_v14, %v266_v62  ;;  %v329_v62 = vpop.permute.xlu1 %328 }
 0x303   :  { %v367_v16 = vpop.f32.mrf.mxu1 }
 0x304   :  { %v304_v18 = vadd.f32 %v1934_v13, %v298_v15 }
 0x306   :  { %v305_v19 = vmul.f32 %v304_v18, %v1847_v17 }
 0x308   :  { %v1629_v20 = vpop.eup %1628  ;;  %v1524_v21 = vmul.f32 -1.442695, %v305_v19 }
 0x309   :  { %v374_v22 = vadd.f32 1.0, %v1629_v20  ;;  %v299_v23 = vpop.f32.mrf.mxu3 }
 0x30a   :  { %1630 = vpow2.f32 %v1524_v21 }
 0x30b   :  { %1632 = vrcp.f32 %v374_v22  ;;  %v386_v29 = vand.u32 2147483648, %v374_v22  ;;  %v384_v31 = vand.u32 2147483647, %v374_v22  ;;  %vm380_vm9 = vweird.f32 %v374_v22 }
 0x30d   :  { %v387_v34 = vor.u32 1.1754944e-38, %v386_v29  ;;  %vm385_vm11 = vcmp.eq.f32.partialorder %v384_v31, 8.507059e+37 }
 0x310   :  { %v1631_v24 = vpop.eup %1630 }
 0x311   :  { %v1633_v25 = vpop.eup %1632  ;;  %v309_v26 = vadd.f32 1.0, %v1631_v24 }
 0x312   :  { %v376_v27 = vmul.f32 %v1633_v25, %v374_v22  ;;  %vm381_vm8 = vweird.f32 %v1633_v25 }
 0x313   :  { %1634 = vrcp.f32 %v309_v26  ;;  %vm382_vm10 = vmor %vm380_vm9, %vm381_vm8  ;;  %v321_v41 = vand.u32 2147483648, %v309_v26  ;;  %v319_v44 = vand.u32 2147483647, %v309_v26  ;;  %vm315_vm13 = vweird.f32 %v309_v26 }
 0x314   :  { %v377_v28 = vsub.f32 1.0, %v376_v27 }
 0x315   :  { %v322_v47 = vor.u32 1.1754944e-38, %v321_v41  ;;  %vm320_vm15 = vcmp.eq.f32.partialorder %v319_v44, 8.507059e+37 }
 0x316   :  { %v378_v30 = vmul.f32 %v1633_v25, %v377_v28 }
 0x318   :  { %v379_v32 = vadd.f32 %v1633_v25, %v378_v30 }
 0x319   :  { %v1635_v33 = vpop.eup %1634 }
 0x31a   :  { %v311_v36 = vmul.f32 %v1635_v33, %v309_v26  ;;  %v383_v37 = vsel %vm382_vm10, %v1633_v25, %v379_v32  ;;  %vm316_vm12 = vweird.f32 %v1635_v33  ;;  %v138_v26 = vadd.f32 %v1838_v12, %v1831_v8 }
 0x31b   :  { %v388_v38 = vsel %vm385_vm11, %v387_v34, %v383_v37  ;;  %vm317_vm14 = vmor %vm315_vm13, %vm316_vm12 }
 0x31c   :  { %v312_v39 = vsub.f32 1.0, %v311_v36  ;;  %v390_v40 = vmul.f32 %v388_v38, %v1847_v17 }
 0x31e   :  { %v391_v42 = vadd.f32 %v390_v40, %v1852_v35  ;;  %v313_v43 = vmul.f32 %v1635_v33, %v312_v39 }
 0x320   :  { %394 = vrot.lane.b32.xlu0 %v391_v42, %s1722_s22  ;;  %v314_v46 = vadd.f32 %v1635_v33, %v313_v43  ;;  %v392_v7 = vmul.f32 %v391_v42, %v1862_v45 }
 0x322   :  { %v318_v48 = vsel %vm317_vm14, %v1635_v33, %v314_v46 }
 0x323   :  { %v323_v53 = vsel %vm320_vm15, %v322_v47, %v318_v48 }
 0x324   :  { %v325_v54 = vmul.f32 %v323_v53, %v1847_v17 }
 0x326   :  { %v326_v55 = vadd.f32 %v325_v54, %v1852_v35 }
 0x328   :  { %333 = vrot.lane.b32.xlu2 %v326_v55, %s1722_s22  ;;  %v331_v63 = vmul.f32 %v329_v62, %v326_v55 }
 0x382   :  { %v334_v56 = vpop.permute.xlu2 %333 }
 0x383   :  { %v336_v57 = vmul.f32 %v334_v56, %v326_v55 }
 0x385   :  { %338 = vrot.lane.b32.xlu2 %v336_v57, %s1723_s25 }
 0x392   :  { %v395_v58 = vpop.permute.xlu0 %394 }
 0x393   :  { %v397_v59 = vmul.f32 %v395_v58, %v391_v42 }
 0x395   :  { %399 = vrot.lane.b32.xlu0 %v397_v59, %s1723_s25 }
 0x3df   :  { %v339_v1 = vpop.permute.xlu2 %338 }
 0x3e0   :  { %v1946_v4 = vadd.f32 %v339_v1, %v331_v63 }
 0x3e2   :  { %1636 = vtanh.f32 %v1946_v4 }
 0x3e8   :  { %v1637_v6 = vpop.eup %1636 }
 0x3e9   :  { %344 = vrot.lane.b32.xlu1 %v1637_v6, %s1722_s22 }
 0x407   :  { %v400_v9 = vpop.permute.xlu0 %399 }
 0x408   :  { %v1951_v10 = vadd.f32 %v400_v9, %v392_v7 }
 0x40a   :  { %1638 = vtanh.f32 %v1951_v10 }
 0x410   :  { %v1639_v14 = vpop.eup %1638 }
 0x411   :  { %405 = vrot.lane.b32.xlu2 %v1639_v14, %s1722_s22 }
 0x45b   :  { %v345_v15 = vpop.permute.xlu1 %344 }
 0x45c   :  { %v347_v16 = vmul.f32 %v345_v15, %v326_v55 }
 0x45e   :  { %v1955_v18 = vpack.c.bf16 %v347_v16, %v347_v16 }
 0x460   :  { %v410_v19 = vunpack.c.l.b16 %v1955_v18 }
 0x462   :  { %v411_v20 = vpack.c.b16 %v410_v19, %v410_v19 }
 0x464   :  { %412 = vrot.lane.b32.xlu0 %v411_v20, %s1723_s25 }
 0x46b   :  { %v406_v21 = vpop.permute.xlu2 %405 }
 0x46c   :  { %v408_v22 = vmul.f32 %v406_v21, %v391_v42 }
 0x46e   :  { %v409_v45 = vpack.c.bf16 %v408_v22, %v408_v22 }
 0x470   :  { %431 = vrot.lane.b32.xlu1 %v409_v45, %s1723_s25 }
 0x4d6   :  { %v413_v23 = vpop.permute.xlu0 %412 }
 0x4d7   :  { %1527 = vmatmul.msk.bf16.vlgmr.msra.gmra.mxu2 %vm110_vm0, %v413_v23 }
 0x4d8   :  { %703 = vmatpush.bf16.msra.mxu2 %v1875_v49 }
 0x4dc   :  { %704 = vmatpush.bf16.msra.mxu2 %v1889_v51 }
 0x4e2   :  { %v432_v24 = vpop.permute.xlu1 %431 }
 0x4e3   :  { %1528 = vmatmul.msk.bf16.vlgmr.msra.gmra.mxu3 %vm110_vm0, %v432_v24  ;;  %1530 = vmatmul.msk.bf16.vlgmr.msrb.gmra.mxu1 %vm110_vm0, %v432_v24 }
 0x4e4   :  { %722 = vmatpush.bf16.msra.mxu3 %v1880_v50  ;;  %843 = vmatpush.bf16.msrb.mxu1 %v1875_v49 }
 0x4e8   :  { %723 = vmatpush.bf16.msra.mxu3 %v1894_v52  ;;  %844 = vmatpush.bf16.msrb.mxu1 %v1889_v51 }
 0x55a   :  { %v426_v25 = vpop.f32.mrf.mxu2 }
 0x560   :  { %v505_v27 = vpop.f32.mrf.mxu1 }
 0x561   :  { %v509_v28 = vadd.f32 %v505_v27, %v138_v26 }
 0x562   :  { %v428_v29 = vpop.f32.mrf.mxu2 }
 0x563   :  { %v510_v30 = vmul.f32 %v509_v28, %v1847_v17 }
 0x565   :  { %v1531_v31 = vmul.f32 -1.442695, %v510_v30 }
 0x566   :  { %v445_v32 = vpop.f32.mrf.mxu3 }
 0x567   :  { %1640 = vpow2.f32 %v1531_v31  ;;  %v446_v33 = vadd.f32 %v445_v32, %v426_v25 }
 0x568   :  { %v507_v34 = vpop.f32.mrf.mxu1 }
 0x569   :  { %v449_v36 = vadd.f32 %v1934_v13, %v446_v33 }
 0x56b   :  { %v450_v37 = vmul.f32 %v449_v36, %v1847_v17 }
 0x56d   :  { %v1641_v38 = vpop.eup %1640  ;;  %v1529_v39 = vmul.f32 -1.442695, %v450_v37 }
 0x56e   :  { %v514_v40 = vadd.f32 1.0, %v1641_v38  ;;  %v447_v41 = vpop.f32.mrf.mxu3 }
 0x56f   :  { %1642 = vpow2.f32 %v1529_v39 }
 0x570   :  { %1644 = vrcp.f32 %v514_v40  ;;  %v526_v47 = vand.u32 2147483648, %v514_v40  ;;  %v524_v53 = vand.u32 2147483647, %v514_v40  ;;  %vm520_vm2 = vweird.f32 %v514_v40 }
 0x572   :  { %v527_v56 = vor.u32 1.1754944e-38, %v526_v47  ;;  %vm525_vm4 = vcmp.eq.f32.partialorder %v524_v53, 8.507059e+37 }
 0x575   :  { %v1643_v8 = vpop.eup %1642 }
 0x576   :  { %v1645_v42 = vpop.eup %1644  ;;  %v454_v43 = vadd.f32 1.0, %v1643_v8 }
 0x577   :  { %v516_v44 = vmul.f32 %v1645_v42, %v514_v40  ;;  %vm521_vm1 = vweird.f32 %v1645_v42 }
 0x578   :  { %1646 = vrcp.f32 %v454_v43  ;;  %vm522_vm3 = vmor %vm520_vm2, %vm521_vm1  ;;  %v466_v1 = vand.u32 2147483648, %v454_v43  ;;  %v464_v9 = vand.u32 2147483647, %v454_v43  ;;  %vm460_vm6 = vweird.f32 %v454_v43 }
 0x579   :  { %v517_v46 = vsub.f32 1.0, %v516_v44 }
 0x57a   :  { %v467_v15 = vor.u32 1.1754944e-38, %v466_v1  ;;  %vm465_vm8 = vcmp.eq.f32.partialorder %v464_v9, 8.507059e+37 }
 0x57b   :  { %v518_v48 = vmul.f32 %v1645_v42, %v517_v46 }
 0x57d   :  { %v519_v54 = vadd.f32 %v1645_v42, %v518_v48 }
 0x57e   :  { %v1647_v55 = vpop.eup %1646 }
 0x57f   :  { %v456_v57 = vmul.f32 %v1647_v55, %v454_v43  ;;  %v523_v58 = vsel %vm522_vm3, %v1645_v42, %v519_v54  ;;  %vm461_vm5 = vweird.f32 %v1647_v55  ;;  %v140_v42 = vadd.f32 %v1838_v12, %v1833_v11 }
 0x580   :  { %v528_v59 = vsel %vm525_vm4, %v527_v56, %v523_v58  ;;  %vm462_vm7 = vmor %vm460_vm6, %vm461_vm5 }
 0x581   :  { %v457_v62 = vsub.f32 1.0, %v456_v57  ;;  %v530_v63 = vmul.f32 %v528_v59, %v1847_v17 }
 0x583   :  { %v531_v6 = vadd.f32 %v530_v63, %v1852_v35  ;;  %v458_v7 = vmul.f32 %v1647_v55, %v457_v62 }
 0x585   :  { %534 = vrot.lane.b32.xlu0 %v531_v6, %s1722_s22  ;;  %v459_v14 = vadd.f32 %v1647_v55, %v458_v7  ;;  %v532_v25 = vmul.f32 %v531_v6, %v1951_v10 }
 0x587   :  { %v463_v16 = vsel %vm462_vm7, %v1647_v55, %v459_v14 }
 0x588   :  { %v468_v19 = vsel %vm465_vm8, %v467_v15, %v463_v16 }
 0x589   :  { %v470_v20 = vmul.f32 %v468_v19, %v1847_v17 }
 0x58b   :  { %v471_v21 = vadd.f32 %v470_v20, %v1852_v35 }
 0x58d   :  { %474 = vrot.lane.b32.xlu2 %v471_v21, %s1722_s22  ;;  %v472_v28 = vmul.f32 %v471_v21, %v1946_v4 }
 0x5e7   :  { %v475_v22 = vpop.permute.xlu2 %474 }
 0x5e8   :  { %v477_v45 = vmul.f32 %v475_v22, %v471_v21 }
 0x5ea   :  { %479 = vrot.lane.b32.xlu1 %v477_v45, %s1723_s25 }
 0x5f7   :  { %v535_v23 = vpop.permute.xlu0 %534 }
 0x5f8   :  { %v537_v24 = vmul.f32 %v535_v23, %v531_v6 }
 0x5fa   :  { %539 = vrot.lane.b32.xlu2 %v537_v24, %s1723_s25 }
 0x654   :  { %v540_v26 = vpop.permute.xlu2 %539 }
 0x655   :  { %v1983_v27 = vadd.f32 %v540_v26, %v532_v25 }
 0x657   :  { %1648 = vtanh.f32 %v1983_v27 }
 0x65c   :  { %v480_v29 = vpop.permute.xlu1 %479 }
 0x65d   :  { %v1649_v30 = vpop.eup %1648  ;;  %v1987_v31 = vadd.f32 %v480_v29, %v472_v28 }
 0x65e   :  { %545 = vrot.lane.b32.xlu1 %v1649_v30, %s1722_s22 }
 0x65f   :  { %1650 = vtanh.f32 %v1987_v31 }
 0x665   :  { %v1651_v32 = vpop.eup %1650 }
 0x666   :  { %485 = vrot.lane.b32.xlu0 %v1651_v32, %s1722_s22 }
 0x6d0   :  { %v546_v33 = vpop.permute.xlu1 %545 }
 0x6d1   :  { %v548_v10 = vmul.f32 %v546_v33, %v531_v6 }
 0x6d3   :  { %v549_v34 = vpack.c.bf16 %v548_v10, %v548_v10 }
 0x6d5   :  { %571 = vrot.lane.b32.xlu0 %v549_v34, %s1723_s25 }
 0x6d8   :  { %v486_v36 = vpop.permute.xlu0 %485 }
 0x6d9   :  { %v488_v37 = vmul.f32 %v486_v36, %v471_v21 }
 0x6db   :  { %v1993_v38 = vpack.c.bf16 %v488_v37, %v488_v37 }
 0x6dd   :  { %v550_v4 = vunpack.c.l.b16 %v1993_v38 }
 0x6df   :  { %v551_v39 = vpack.c.b16 %v550_v4, %v550_v4 }
 0x6e1   :  { %552 = vrot.lane.b32.xlu2 %v551_v39, %s1723_s25 }
 0x73b   :  { %v553_v40 = vpop.permute.xlu2 %552 }
 0x73c   :  { %1532 = vmatmul.msk.bf16.vlgmr.msrb.gmra.mxu2 %vm110_vm0, %v553_v40 }
 0x73d   :  { %862 = vmatpush.bf16.msrb.mxu2 %v1880_v50 }
 0x741   :  { %863 = vmatpush.bf16.msrb.mxu2 %v1894_v52 }
 0x747   :  { %v572_v41 = vpop.permute.xlu0 %571 }
 0x748   :  { %1533 = vmatmul.msk.bf16.vlgmr.msrb.gmra.mxu3 %vm110_vm0, %v572_v41  ;;  %1535 = vmatmul.msk.bf16.vlgmr.msra.gmra.mxu1 %vm110_vm0, %v572_v41 }
 0x749   :  { %922 = vmatpush.bf16.msrb.mxu3 %v1804_v2  ;;  %1002 = vmatpush.bf16.msra.mxu1 %v1880_v50 }
 0x74d   :  { %923 = vmatpush.bf16.msrb.mxu3 %v1816_v5  ;;  %1003 = vmatpush.bf16.msra.mxu1 %v1894_v52 }
 0x7bf   :  { %v566_v8 = vpop.f32.mrf.mxu2 }
 0x7c5   :  { %v645_v43 = vpop.f32.mrf.mxu1 }
 0x7c6   :  { %v649_v44 = vadd.f32 %v645_v43, %v140_v42 }
 0x7c7   :  { %v568_v46 = vpop.f32.mrf.mxu2 }
 0x7c8   :  { %v650_v47 = vmul.f32 %v649_v44, %v1847_v17 }
 0x7ca   :  { %v1536_v48 = vmul.f32 -1.442695, %v650_v47 }
 0x7cb   :  { %v585_v53 = vpop.f32.mrf.mxu3 }
 0x7cc   :  { %1652 = vpow2.f32 %v1536_v48  ;;  %v586_v54 = vadd.f32 %v585_v53, %v566_v8 }
 0x7cd   :  { %v647_v55 = vpop.f32.mrf.mxu1 }
 0x7ce   :  { %v589_v56 = vadd.f32 %v1934_v13, %v586_v54 }
 0x7d0   :  { %v590_v57 = vmul.f32 %v589_v56, %v1847_v17 }
 0x7d2   :  { %v1653_v58 = vpop.eup %1652  ;;  %v1534_v59 = vmul.f32 -1.442695, %v590_v57 }
 0x7d3   :  { %v654_v62 = vadd.f32 1.0, %v1653_v58  ;;  %v587_v63 = vpop.f32.mrf.mxu3 }
 0x7d4   :  { %1654 = vpow2.f32 %v1534_v59 }
 0x7d5   :  { %1656 = vrcp.f32 %v654_v62  ;;  %v666_v14 = vand.u32 2147483648, %v654_v62  ;;  %v664_v16 = vand.u32 2147483647, %v654_v62  ;;  %vm660_vm10 = vweird.f32 %v654_v62 }
 0x7d7   :  { %v667_v21 = vor.u32 1.1754944e-38, %v666_v14  ;;  %vm665_vm12 = vcmp.eq.f32.partialorder %v664_v16, 8.507059e+37 }
 0x7da   :  { %v1655_v11 = vpop.eup %1654 }
 0x7db   :  { %v1657_v1 = vpop.eup %1656  ;;  %v594_v6 = vadd.f32 1.0, %v1655_v11  ;;  %v143_v11 = vadd.f32 %v1838_v12, %v1921_v60 }
 0x7dc   :  { %v656_v7 = vmul.f32 %v1657_v1, %v654_v62  ;;  %vm661_vm9 = vweird.f32 %v1657_v1 }
 0x7dd   :  { %1658 = vrcp.f32 %v594_v6  ;;  %vm662_vm11 = vmor %vm660_vm10, %vm661_vm9  ;;  %v606_v26 = vand.u32 2147483648, %v594_v6  ;;  %v604_v30 = vand.u32 2147483647, %v594_v6  ;;  %vm600_vm14 = vweird.f32 %v594_v6 }
 0x7de   :  { %v657_v9 = vsub.f32 1.0, %v656_v7 }
 0x7df   :  { %v607_v33 = vor.u32 1.1754944e-38, %v606_v26  ;;  %vm605_vm1 = vcmp.eq.f32.partialorder %v604_v30, 8.507059e+37 }
 0x7e0   :  { %v658_v15 = vmul.f32 %v1657_v1, %v657_v9 }
 0x7e2   :  { %v659_v19 = vadd.f32 %v1657_v1, %v658_v15 }
 0x7e3   :  { %v1659_v20 = vpop.eup %1658 }
 0x7e4   :  { %v596_v22 = vmul.f32 %v1659_v20, %v594_v6  ;;  %v663_v45 = vsel %vm662_vm11, %v1657_v1, %v659_v19  ;;  %vm601_vm13 = vweird.f32 %v1659_v20 }
 0x7e5   :  { %v668_v23 = vsel %vm665_vm12, %v667_v21, %v663_v45  ;;  %vm602_vm15 = vmor %vm600_vm14, %vm601_vm13 }
 0x7e6   :  { %v597_v24 = vsub.f32 1.0, %v596_v22  ;;  %v670_v25 = vmul.f32 %v668_v23, %v1847_v17 }
 0x7e8   :  { %v671_v28 = vadd.f32 %v670_v25, %v1852_v35  ;;  %v598_v29 = vmul.f32 %v1659_v20, %v597_v24 }
 0x7ea   :  { %674 = vrot.lane.b32.xlu2 %v671_v28, %s1722_s22  ;;  %v599_v32 = vadd.f32 %v1659_v20, %v598_v29  ;;  %v672_v8 = vmul.f32 %v671_v28, %v1983_v27 }
 0x7ec   :  { %v603_v10 = vsel %vm602_vm15, %v1659_v20, %v599_v32 }
 0x7ed   :  { %v608_v34 = vsel %vm605_vm1, %v607_v33, %v603_v10 }
 0x7ee   :  { %v610_v36 = vmul.f32 %v608_v34, %v1847_v17 }
 0x7f0   :  { %v611_v37 = vadd.f32 %v610_v36, %v1852_v35 }
 0x7f2   :  { %614 = vrot.lane.b32.xlu1 %v611_v37, %s1722_s22  ;;  %v612_v46 = vmul.f32 %v611_v37, %v1987_v31 }
 0x844   :  { %v675_v4 = vpop.permute.xlu2 %674 }
 0x845   :  { %v677_v39 = vmul.f32 %v675_v4, %v671_v28 }
 0x847   :  { %679 = vrot.lane.b32.xlu1 %v677_v39, %s1723_s25 }
 0x864   :  { %v615_v40 = vpop.permute.xlu1 %614 }
 0x865   :  { %v617_v41 = vmul.f32 %v615_v40, %v611_v37 }
 0x867   :  { %619 = vrot.lane.b32.xlu0 %v617_v41, %s1723_s25 }
 0x8b9   :  { %v680_v42 = vpop.permute.xlu1 %679 }
 0x8ba   :  { %v2020_v43 = vadd.f32 %v680_v42, %v672_v8 }
 0x8bc   :  { %1660 = vtanh.f32 %v2020_v43 }
 0x8c2   :  { %v1661_v44 = vpop.eup %1660 }
 0x8c3   :  { %685 = vrot.lane.b32.xlu0 %v1661_v44, %s1722_s22 }
 0x8d9   :  { %v620_v47 = vpop.permute.xlu0 %619 }
 0x8da   :  { %v2025_v48 = vadd.f32 %v620_v47, %v612_v46 }
 0x8dc   :  { %1662 = vtanh.f32 %v2025_v48 }
 0x8e2   :  { %v1663_v53 = vpop.eup %1662 }
 0x8e3   :  { %625 = vrot.lane.b32.xlu2 %v1663_v53, %s1722_s22 }
 0x935   :  { %v686_v54 = vpop.permute.xlu0 %685 }
 0x936   :  { %v688_v27 = vmul.f32 %v686_v54, %v671_v28 }
 0x938   :  { %v689_v55 = vpack.c.bf16 %v688_v27, %v688_v27 }
 0x93a   :  { %711 = vrot.lane.b32.xlu2 %v689_v55, %s1723_s25 }
 0x93d   :  { %v626_v56 = vpop.permute.xlu2 %625 }
 0x93e   :  { %v628_v57 = vmul.f32 %v626_v56, %v611_v37 }
 0x940   :  { %v2030_v58 = vpack.c.bf16 %v628_v57, %v628_v57 }
 0x942   :  { %v690_v59 = vunpack.c.l.b16 %v2030_v58 }
 0x944   :  { %v691_v31 = vpack.c.b16 %v690_v59, %v690_v59 }
 0x946   :  { %692 = vrot.lane.b32.xlu1 %v691_v31, %s1723_s25 }
 0x994   :  { %v712_v62 = vpop.permute.xlu2 %711 }
 0x995   :  { %1538 = vmatmul.msk.bf16.vlgmr.msra.gmra.mxu3 %vm110_vm0, %v712_v62  ;;  %1540 = vmatmul.msk.bf16.vlgmr.msrb.gmra.mxu0 %vm110_vm0, %v712_v62 }
 0x996   :  { %1142 = vmatpush.bf16.msrb.mxu0 %v1880_v50  ;;  %1123 = vmatpush.bf16.msra.mxu3 %v1875_v49 }
 0x99a   :  { %1143 = vmatpush.bf16.msrb.mxu0 %v1894_v52  ;;  %1124 = vmatpush.bf16.msra.mxu3 %v1889_v51 }
 0x9b8   :  { %v693_v63 = vpop.permute.xlu1 %692 }
 0x9b9   :  { %1537 = vmatmul.msk.bf16.vlgmr.msra.gmra.mxu2 %vm110_vm0, %v693_v63 }
 0x9ba   :  { %1062 = vmatpush.bf16.msra.mxu2 %v1804_v2 }
 0x9be   :  { %1063 = vmatpush.bf16.msra.mxu2 %v1816_v5 }
 0xa12   :  { %v785_v1 = vpop.f32.mrf.mxu0 }
 0xa13   :  { %v789_v6 = vadd.f32 %v785_v1, %v143_v11 }
 0xa15   :  { %v790_v7 = vmul.f32 %v789_v6, %v1847_v17 }
 0xa17   :  { %v1541_v9 = vmul.f32 -1.442695, %v790_v7 }
 0xa18   :  { %v725_v14 = vpop.f32.mrf.mxu3 }
 0xa19   :  { %1664 = vpow2.f32 %v1541_v9 }
 0xa1a   :  { %v787_v15 = vpop.f32.mrf.mxu0 }
 0xa1f   :  { %v1665_v16 = vpop.eup %1664 }
 0xa20   :  { %v794_v19 = vadd.f32 1.0, %v1665_v16  ;;  %v727_v20 = vpop.f32.mrf.mxu3 }
 0xa22   :  { %1666 = vrcp.f32 %v794_v19  ;;  %v806_v23 = vand.u32 2147483648, %v794_v19  ;;  %v804_v25 = vand.u32 2147483647, %v794_v19  ;;  %vm800_vm3 = vweird.f32 %v794_v19 }
 0xa24   :  { %v807_v26 = vor.u32 1.1754944e-38, %v806_v23  ;;  %vm805_vm5 = vcmp.eq.f32.partialorder %v804_v25, 8.507059e+37 }
 0xa28   :  { %v1667_v21 = vpop.eup %1666 }
 0xa29   :  { %v796_v22 = vmul.f32 %v1667_v21, %v794_v19  ;;  %vm801_vm2 = vweird.f32 %v1667_v21 }
 0xa2a   :  { %vm802_vm4 = vmor %vm800_vm3, %vm801_vm2 }
 0xa2b   :  { %v797_v45 = vsub.f32 1.0, %v796_v22 }
 0xa2d   :  { %v798_v24 = vmul.f32 %v1667_v21, %v797_v45 }
 0xa2f   :  { %v799_v60 = vadd.f32 %v1667_v21, %v798_v24 }
 0xa31   :  { %v803_v28 = vsel %vm802_vm4, %v1667_v21, %v799_v60  ;;  %v145_v60 = vadd.f32 %v1838_v12, %v1923_v61 }
 0xa32   :  { %v808_v29 = vsel %vm805_vm5, %v807_v26, %v803_v28 }
 0xa33   :  { %v810_v30 = vmul.f32 %v808_v29, %v1847_v17 }
 0xa35   :  { %v811_v32 = vadd.f32 %v810_v30, %v1852_v35 }
 0xa37   :  { %814 = vrot.lane.b32.xlu0 %v811_v32, %s1722_s22  ;;  %v812_v11 = vmul.f32 %v811_v32, %v2020_v43 }
 0xa3c   :  { %v706_v33 = vpop.f32.mrf.mxu2 }
 0xa3d   :  { %v726_v10 = vadd.f32 %v725_v14, %v706_v33 }
 0xa3f   :  { %v729_v34 = vadd.f32 %v1934_v13, %v726_v10 }
 0xa41   :  { %v730_v36 = vmul.f32 %v729_v34, %v1847_v17 }
 0xa43   :  { %v1539_v37 = vmul.f32 -1.442695, %v730_v36 }
 0xa44   :  { %v708_v4 = vpop.f32.mrf.mxu2 }
 0xa45   :  { %1668 = vpow2.f32 %v1539_v37 }
 0xa4b   :  { %v1669_v39 = vpop.eup %1668 }
 0xa4c   :  { %v734_v40 = vadd.f32 1.0, %v1669_v39 }
 0xa4e   :  { %1670 = vrcp.f32 %v734_v40  ;;  %v746_v44 = vand.u32 2147483648, %v734_v40  ;;  %v744_v47 = vand.u32 2147483647, %v734_v40  ;;  %vm740_vm7 = vweird.f32 %v734_v40 }
 0xa50   :  { %v747_v54 = vor.u32 1.1754944e-38, %v746_v44  ;;  %vm745_vm9 = vcmp.eq.f32.partialorder %v744_v47, 8.507059e+37 }
 0xa54   :  { %v1671_v41 = vpop.eup %1670 }
 0xa55   :  { %v736_v8 = vmul.f32 %v1671_v41, %v734_v40  ;;  %vm741_vm6 = vweird.f32 %v1671_v41 }
 0xa56   :  { %vm742_vm8 = vmor %vm740_vm7, %vm741_vm6 }
 0xa57   :  { %v737_v42 = vsub.f32 1.0, %v736_v8 }
 0xa59   :  { %v738_v46 = vmul.f32 %v1671_v41, %v737_v42 }
 0xa5b   :  { %v739_v53 = vadd.f32 %v1671_v41, %v738_v46 }
 0xa5d   :  { %v743_v27 = vsel %vm742_vm8, %v1671_v41, %v739_v53 }
 0xa5e   :  { %v748_v55 = vsel %vm745_vm9, %v747_v54, %v743_v27 }
 0xa5f   :  { %v750_v56 = vmul.f32 %v748_v55, %v1847_v17 }
 0xa61   :  { %v751_v57 = vadd.f32 %v750_v56, %v1852_v35 }
 0xa63   :  { %754 = vrot.lane.b32.xlu1 %v751_v57, %s1722_s22  ;;  %v752_v9 = vmul.f32 %v751_v57, %v2025_v48 }
 0xaa9   :  { %v815_v59 = vpop.permute.xlu0 %814 }
 0xaaa   :  { %v817_v31 = vmul.f32 %v815_v59, %v811_v32 }
 0xaac   :  { %819 = vrot.lane.b32.xlu2 %v817_v31, %s1723_s25 }
 0xad5   :  { %v755_v62 = vpop.permute.xlu1 %754 }
 0xad6   :  { %v757_v63 = vmul.f32 %v755_v62, %v751_v57 }
 0xad8   :  { %759 = vrot.lane.b32.xlu0 %v757_v63, %s1723_s25 }
 0xb06   :  { %v820_v1 = vpop.permute.xlu2 %819 }
 0xb07   :  { %v2057_v6 = vadd.f32 %v820_v1, %v812_v11 }
 0xb09   :  { %1672 = vtanh.f32 %v2057_v6 }
 0xb0f   :  { %v1673_v7 = vpop.eup %1672 }
 0xb10   :  { %825 = vrot.lane.b32.xlu1 %v1673_v7, %s1722_s22 }
 0xb4a   :  { %v760_v14 = vpop.permute.xlu0 %759 }
 0xb4b   :  { %v2062_v15 = vadd.f32 %v760_v14, %v752_v9 }
 0xb4d   :  { %1674 = vtanh.f32 %v2062_v15 }
 0xb53   :  { %v1675_v16 = vpop.eup %1674 }
 0xb54   :  { %765 = vrot.lane.b32.xlu2 %v1675_v16, %s1722_s22 }
 0xb82   :  { %v826_v19 = vpop.permute.xlu1 %825 }
 0xb83   :  { %v828_v43 = vmul.f32 %v826_v19, %v811_v32 }
 0xb85   :  { %v829_v20 = vpack.c.bf16 %v828_v43, %v828_v43 }
 0xb87   :  { %851 = vrot.lane.b32.xlu0 %v829_v20, %s1723_s25 }
 0xbae   :  { %v766_v21 = vpop.permute.xlu2 %765 }
 0xbaf   :  { %v768_v22 = vmul.f32 %v766_v21, %v751_v57 }
 0xbb1   :  { %v2067_v45 = vpack.c.bf16 %v768_v22, %v768_v22 }
 0xbb3   :  { %v830_v23 = vunpack.c.l.b16 %v2067_v45 }
 0xbb5   :  { %v831_v48 = vpack.c.b16 %v830_v23, %v830_v23 }
 0xbb7   :  { %832 = vrot.lane.b32.xlu1 %v831_v48, %s1723_s25 }
 0xbf9   :  { %v852_v24 = vpop.permute.xlu0 %851 }
 0xbfa   :  { %1543 = vmatmul.msk.bf16.vlgmr.msrb.gmra.mxu2 %vm110_vm0, %v852_v24  ;;  %1545 = vmatmul.msk.bf16.vlgmr.msrb.gmra.mxu3 %vm110_vm0, %v852_v24 }
 0xbfb   :  { %1282 = vmatpush.bf16.msrb.mxu3 %v1880_v50  ;;  %1263 = vmatpush.bf16.msrb.mxu2 %v1875_v49 }
 0xbff   :  { %1283 = vmatpush.bf16.msrb.mxu3 %v1894_v52  ;;  %1264 = vmatpush.bf16.msrb.mxu2 %v1889_v51 }
 0xc29   :  { %v833_v25 = vpop.permute.xlu1 %832 }
 0xc2a   :  { %1542 = vmatmul.msk.bf16.vlgmr.msrb.gmra.mxu1 %vm110_vm0, %v833_v25 }
 0xc2b   :  { %1202 = vmatpush.bf16.msrb.mxu1 %v1804_v2 }
 0xc2f   :  { %1203 = vmatpush.bf16.msrb.mxu1 %v1816_v5 }
 0xc7d   :  { %v865_v26 = vpop.f32.mrf.mxu2  ;;  %v925_v28 = vpop.f32.mrf.mxu3 }
 0xc7e   :  { %v929_v29 = vadd.f32 %v925_v28, %v145_v60 }
 0xc80   :  { %v930_v50 = vmul.f32 %v929_v29, %v1847_v17 }
 0xc82   :  { %v1546_v49 = vmul.f32 -1.442695, %v930_v50 }
 0xc84   :  { %1676 = vpow2.f32 %v1546_v49 }
 0xc85   :  { %v867_v52 = vpop.f32.mrf.mxu2  ;;  %v927_v30 = vpop.f32.mrf.mxu3 }
 0xc8a   :  { %v1677_v51 = vpop.eup %1676 }
 0xc8b   :  { %v934_v32 = vadd.f32 1.0, %v1677_v51 }
 0xc8d   :  { %1678 = vrcp.f32 %v934_v32  ;;  %v946_v34 = vand.u32 2147483648, %v934_v32  ;;  %v944_v36 = vand.u32 2147483647, %v934_v32  ;;  %vm940_vm11 = vweird.f32 %v934_v32 }
 0xc8f   :  { %v947_v61 = vor.u32 1.1754944e-38, %v946_v34  ;;  %vm945_vm13 = vcmp.eq.f32.partialorder %v944_v36, 8.507059e+37 }
 0xc93   :  { %v1679_v33 = vpop.eup %1678 }
 0xc94   :  { %v936_v10 = vmul.f32 %v1679_v33, %v934_v32  ;;  %vm941_vm10 = vweird.f32 %v1679_v33 }
 0xc95   :  { %vm942_vm12 = vmor %vm940_vm11, %vm941_vm10 }
 0xc96   :  { %v937_v2 = vsub.f32 1.0, %v936_v10 }
 0xc98   :  { %v938_v5 = vmul.f32 %v1679_v33, %v937_v2 }
 0xc9a   :  { %v939_v12 = vadd.f32 %v1679_v33, %v938_v5 }
 0xc9c   :  { %v943_v37 = vsel %vm942_vm12, %v1679_v33, %v939_v12  ;;  %v2114_v33 = vld [vmem:[%s2267_s3] ss:$0 sm:$0xff] }
 0xc9d   :  { %v948_v4 = vsel %vm945_vm13, %v947_v61, %v943_v37  ;;  %v148_v10 = vadd.f32 %v2114_v33, %v1925_v0 }
 0xc9e   :  { %v950_v39 = vmul.f32 %v948_v4, %v1847_v17 }
 0xca0   :  { %v951_v40 = vadd.f32 %v950_v39, %v1852_v35 }
 0xca2   :  { %954 = vrot.lane.b32.xlu0 %v951_v40, %s1722_s22  ;;  %v952_v20 = vmul.f32 %v951_v40, %v2057_v6 }
 0xca7   :  { %v846_v41 = vpop.f32.mrf.mxu1 }
 0xca8   :  { %v866_v8 = vadd.f32 %v865_v26, %v846_v41 }
 0xcaa   :  { %v869_v42 = vadd.f32 %v1934_v13, %v866_v8 }
 0xcac   :  { %v870_v44 = vmul.f32 %v869_v42, %v1847_v17 }
 0xcae   :  { %v1544_v46 = vmul.f32 -1.442695, %v870_v44 }
 0xcaf   :  { %v848_v47 = vpop.f32.mrf.mxu1 }
 0xcb0   :  { %1680 = vpow2.f32 %v1544_v46 }
 0xcb6   :  { %v1681_v53 = vpop.eup %1680 }
 0xcb7   :  { %v874_v54 = vadd.f32 1.0, %v1681_v53 }
 0xcb9   :  { %1682 = vrcp.f32 %v874_v54  ;;  %v886_v57 = vand.u32 2147483648, %v874_v54  ;;  %v884_v31 = vand.u32 2147483647, %v874_v54  ;;  %vm880_vm15 = vweird.f32 %v874_v54 }
 0xcbb   :  { %v887_v63 = vor.u32 1.1754944e-38, %v886_v57  ;;  %vm885_vm2 = vcmp.eq.f32.partialorder %v884_v31, 8.507059e+37 }
 0xcbf   :  { %v1683_v27 = vpop.eup %1682 }
 0xcc0   :  { %v876_v55 = vmul.f32 %v1683_v27, %v874_v54  ;;  %vm881_vm14 = vweird.f32 %v1683_v27 }
 0xcc1   :  { %vm882_vm1 = vmor %vm880_vm15, %vm881_vm14 }
 0xcc2   :  { %v877_v56 = vsub.f32 1.0, %v876_v55 }
 0xcc4   :  { %v878_v59 = vmul.f32 %v1683_v27, %v877_v56 }
 0xcc6   :  { %v879_v62 = vadd.f32 %v1683_v27, %v878_v59 }
 0xcc8   :  { %v883_v11 = vsel %vm882_vm1, %v1683_v27, %v879_v62 }
 0xcc9   :  { %v888_v1 = vsel %vm885_vm2, %v887_v63, %v883_v11 }
 0xcca   :  { %v890_v7 = vmul.f32 %v888_v1, %v1847_v17 }
 0xccc   :  { %v891_v9 = vadd.f32 %v890_v7, %v1852_v35 }
 0xcce   :  { %894 = vrot.lane.b32.xlu2 %v891_v9, %s1722_s22  ;;  %v892_v48 = vmul.f32 %v891_v9, %v2062_v15 }
 0xd14   :  { %v955_v14 = vpop.permute.xlu0 %954 }
 0xd15   :  { %v957_v16 = vmul.f32 %v955_v14, %v951_v40 }
 0xd17   :  { %959 = vrot.lane.b32.xlu2 %v957_v16, %s1723_s25 }
 0xd28   :  { %v895_v19 = vpop.permute.xlu2 %894 }
 0xd29   :  { %v897_v43 = vmul.f32 %v895_v19, %v891_v9 }
 0xd2b   :  { %899 = vrot.lane.b32.xlu1 %v897_v43, %s1723_s25 }
 0xd71   :  { %v960_v21 = vpop.permute.xlu2 %959 }
 0xd72   :  { %v2094_v22 = vadd.f32 %v960_v21, %v952_v20 }
 0xd74   :  { %1684 = vtanh.f32 %v2094_v22 }
 0xd7a   :  { %v1685_v23 = vpop.eup %1684 }
 0xd7b   :  { %965 = vrot.lane.b32.xlu1 %v1685_v23, %s1722_s22 }
 0xd9d   :  { %v900_v24 = vpop.permute.xlu1 %899 }
 0xd9e   :  { %v2099_v25 = vadd.f32 %v900_v24, %v892_v48 }
 0xda0   :  { %1686 = vtanh.f32 %v2099_v25 }
 0xda6   :  { %v1687_v60 = vpop.eup %1686 }
 0xda7   :  { %905 = vrot.lane.b32.xlu0 %v1687_v60, %s1722_s22 }
 0xded   :  { %v966_v26 = vpop.permute.xlu1 %965 }
 0xdee   :  { %v968_v6 = vmul.f32 %v966_v26, %v951_v40 }
 0xdf0   :  { %v969_v28 = vpack.c.bf16 %v968_v6, %v968_v6 }
 0xdf2   :  { %991 = vrot.lane.b32.xlu0 %v969_v28, %s1723_s25 }
 0xe19   :  { %v906_v29 = vpop.permute.xlu0 %905 }
 0xe1a   :  { %v908_v50 = vmul.f32 %v906_v29, %v891_v9 }
 0xe1c   :  { %v2104_v49 = vpack.c.bf16 %v908_v50, %v908_v50 }
 0xe1e   :  { %v970_v52 = vunpack.c.l.b16 %v2104_v49 }
 0xe20   :  { %v971_v15 = vpack.c.b16 %v970_v52, %v970_v52 }
 0xe22   :  { %972 = vrot.lane.b32.xlu2 %v971_v15, %s1723_s25 }
 0xe64   :  { %v992_v30 = vpop.permute.xlu0 %991 }
 0xe65   :  { %1548 = vmatmul.msk.bf16.vlgmr.msra.gmra.mxu1 %vm110_vm0, %v992_v30  ;;  %1550 = vmatmul.msk.bf16.vlgmr.msra.gmra.mxu2 %vm110_vm0, %v992_v30 }
 0xe7c   :  { %v973_v51 = vpop.permute.xlu2 %972 }
 0xe7d   :  { %1547 = vmatmul.msk.bf16.vlgmr.msra.gmra.mxu0 %vm110_vm0, %v973_v51 }
 0xee2   :  { %v1005_v32 = vpop.f32.mrf.mxu1 }
 0xee8   :  { %v1065_v2 = vpop.f32.mrf.mxu2 }
 0xee9   :  { %v1069_v34 = vadd.f32 %v1065_v2, %v148_v10 }
 0xeea   :  { %v1007_v5 = vpop.f32.mrf.mxu1 }
 0xeeb   :  { %v1070_v36 = vmul.f32 %v1069_v34, %v1847_v17 }
 0xeed   :  { %v1551_v12 = vmul.f32 -1.442695, %v1070_v36 }
 0xeef   :  { %1688 = vpow2.f32 %v1551_v12 }
 0xef0   :  { %v1067_v61 = vpop.f32.mrf.mxu2 }
 0xef5   :  { %v1689_v37 = vpop.eup %1688 }
 0xef6   :  { %v1074_v4 = vadd.f32 1.0, %v1689_v37 }
 0xef8   :  { %1690 = vrcp.f32 %v1074_v4  ;;  %v1086_v53 = vand.u32 2147483648, %v1074_v4  ;;  %v1084_v27 = vand.u32 2147483647, %v1074_v4  ;;  %vm1080_vm4 = vweird.f32 %v1074_v4 }
 0xefa   :  { %v986_v39 = vpop.f32.mrf.mxu0  ;;  %v1087_v56 = vor.u32 1.1754944e-38, %v1086_v53  ;;  %vm1085_vm6 = vcmp.eq.f32.partialorder %v1084_v27, 8.507059e+37 }
 0xefb   :  { %v1006_v40 = vadd.f32 %v1005_v32, %v986_v39 }
 0xefd   :  { %v1009_v41 = vadd.f32 %v1934_v13, %v1006_v40 }
 0xefe   :  { %v1691_v8 = vpop.eup %1690 }
 0xeff   :  { %v1076_v42 = vmul.f32 %v1691_v8, %v1074_v4  ;;  %v1010_v44 = vmul.f32 %v1009_v41, %v1847_v17  ;;  %vm1081_vm3 = vweird.f32 %v1691_v8  ;;  %v150_v4 = vadd.f32 %v2114_v33, %v1927_v3 }
 0xf00   :  { %vm1082_vm5 = vmor %vm1080_vm4, %vm1081_vm3  ;;  %vm353_vm4 = vcmask 257024  }
 0xf01   :  { %v1077_v0 = vsub.f32 1.0, %v1076_v42  ;;  %v1549_v46 = vmul.f32 -1.442695, %v1010_v44 }
 0xf02   :  { %v988_v47 = vpop.f32.mrf.mxu0 }
 0xf03   :  { %1692 = vpow2.f32 %v1549_v46  ;;  %v1078_v54 = vmul.f32 %v1691_v8, %v1077_v0 }
 0xf05   :  { %v1079_v55 = vadd.f32 %v1691_v8, %v1078_v54 }
 0xf07   :  { %v1083_v57 = vsel %vm1082_vm5, %v1691_v8, %v1079_v55 }
 0xf08   :  { %v1088_v59 = vsel %vm1085_vm6, %v1087_v56, %v1083_v57 }
 0xf09   :  { %v1693_v13 = vpop.eup %1692  ;;  %v1090_v31 = vmul.f32 %v1088_v59, %v1847_v17 }
 0xf0a   :  { %v1014_v62 = vadd.f32 1.0, %v1693_v13 }
 0xf0b   :  { %v1091_v63 = vadd.f32 %v1090_v31, %v1852_v35 }
 0xf0c   :  { %1694 = vrcp.f32 %v1014_v62  ;;  %v1026_v9 = vand.u32 2147483648, %v1014_v62  ;;  %v1024_v16 = vand.u32 2147483647, %v1014_v62  ;;  %vm1020_vm8 = vweird.f32 %v1014_v62 }
 0xf0d   :  { %1094 = vrot.lane.b32.xlu2 %v1091_v63, %s1722_s22  ;;  %v1092_v28 = vmul.f32 %v1091_v63, %v2094_v22 }
 0xf0e   :  { %v1027_v43 = vor.u32 1.1754944e-38, %v1026_v9  ;;  %vm1025_vm10 = vcmp.eq.f32.partialorder %v1024_v16, 8.507059e+37 }
 0xf12   :  { %v1695_v11 = vpop.eup %1694 }
 0xf13   :  { %v1016_v1 = vmul.f32 %v1695_v11, %v1014_v62  ;;  %vm1021_vm7 = vweird.f32 %v1695_v11 }
 0xf14   :  { %vm1022_vm9 = vmor %vm1020_vm8, %vm1021_vm7 }
 0xf15   :  { %v1017_v7 = vsub.f32 1.0, %v1016_v1  ;;  %v2156_v1 = vld [vmem:[%s2273_s6] ss:$0 sm:$0xff] }
 0xf17   :  { %v1018_v14 = vmul.f32 %v1695_v11, %v1017_v7 }
 0xf19   :  { %v1019_v19 = vadd.f32 %v1695_v11, %v1018_v14 }
 0xf1b   :  { %v1023_v20 = vsel %vm1022_vm9, %v1695_v11, %v1019_v19 }
 0xf1c   :  { %v1028_v21 = vsel %vm1025_vm10, %v1027_v43, %v1023_v20 }
 0xf1d   :  { %v1030_v23 = vmul.f32 %v1028_v21, %v1847_v17 }
 0xf1f   :  { %v1031_v48 = vadd.f32 %v1030_v23, %v1852_v35 }
 0xf21   :  { %1034 = vrot.lane.b32.xlu1 %v1031_v48, %s1722_s22  ;;  %v1032_v15 = vmul.f32 %v1031_v48, %v2099_v25 }
 0xf67   :  { %v1095_v24 = vpop.permute.xlu2 %1094 }
 0xf68   :  { %v1097_v60 = vmul.f32 %v1095_v24, %v1091_v63 }
 0xf6a   :  { %1099 = vrot.lane.b32.xlu1 %v1097_v60, %s1723_s25 }
 0xf93   :  { %v1035_v26 = vpop.permute.xlu1 %1034 }
 0xf94   :  { %v1037_v6 = vmul.f32 %v1035_v26, %v1031_v48 }
 0xf96   :  { %1039 = vrot.lane.b32.xlu0 %v1037_v6, %s1723_s25 }
 0xfdc   :  { %v1100_v29 = vpop.permute.xlu1 %1099 }
 0xfdd   :  { %v2130_v50 = vadd.f32 %v1100_v29, %v1092_v28 }
 0xfdf   :  { %1696 = vtanh.f32 %v2130_v50 }
 0xfe5   :  { %v1697_v52 = vpop.eup %1696 }
 0xfe6   :  { %1105 = vrot.lane.b32.xlu0 %v1697_v52, %s1722_s22 }
0x1008   :  { %v1040_v30 = vpop.permute.xlu0 %1039 }
0x1009   :  { %v2135_v51 = vadd.f32 %v1040_v30, %v1032_v15 }
0x100b   :  { %1698 = vtanh.f32 %v2135_v51 }
0x1011   :  { %v1699_v32 = vpop.eup %1698 }
0x1012   :  { %1045 = vrot.lane.b32.xlu2 %v1699_v32, %s1722_s22 }
0x1058   :  { %v1106_v10 = vpop.permute.xlu0 %1105 }
0x1059   :  { %v1108_v22 = vmul.f32 %v1106_v10, %v1091_v63 }
0x105b   :  { %v1109_v2 = vpack.c.bf16 %v1108_v22, %v1108_v22 }
0x105d   :  { %1131 = vrot.lane.b32.xlu2 %v1109_v2, %s1723_s25 }
0x106c   :  { %v1046_v34 = vpop.permute.xlu2 %1045 }
0x106d   :  { %v1048_v5 = vmul.f32 %v1046_v34, %v1031_v48 }
0x106f   :  { %v2140_v36 = vpack.c.bf16 %v1048_v5, %v1048_v5 }
0x1071   :  { %v1110_v12 = vunpack.c.l.b16 %v2140_v36 }
0x1073   :  { %v1111_v25 = vpack.c.b16 %v1110_v12, %v1110_v12 }
0x1075   :  { %1112 = vrot.lane.b32.xlu1 %v1111_v25, %s1723_s25 }
0x10b7   :  { %v1132_v61 = vpop.permute.xlu2 %1131 }
0x10b8   :  { %1553 = vmatmul.msk.bf16.vlgmr.msrb.gmra.mxu0 %vm110_vm0, %v1132_v61  ;;  %1555 = vmatmul.msk.bf16.vlgmr.msrb.gmra.mxu1 %vm110_vm0, %v1132_v61 }
0x10e7   :  { %v1113_v37 = vpop.permute.xlu1 %1112 }
0x10e8   :  { %1552 = vmatmul.msk.bf16.vlgmr.msra.gmra.mxu3 %vm110_vm0, %v1113_v37 }
0x1135   :  { %v1145_v39 = vpop.f32.mrf.mxu0  ;;  %v1205_v40 = vpop.f32.mrf.mxu1 }
0x1136   :  { %v1209_v41 = vadd.f32 %v1205_v40, %v150_v4 }
0x1138   :  { %v1210_v8 = vmul.f32 %v1209_v41, %v1847_v17 }
0x113a   :  { %v1556_v42 = vmul.f32 -1.442695, %v1210_v8 }
0x113c   :  { %1700 = vpow2.f32 %v1556_v42 }
0x113d   :  { %v1147_v44 = vpop.f32.mrf.mxu0  ;;  %v1207_v0 = vpop.f32.mrf.mxu1 }
0x1142   :  { %v1701_v46 = vpop.eup %1700 }
0x1143   :  { %v1214_v47 = vadd.f32 1.0, %v1701_v46 }
0x1145   :  { %1702 = vrcp.f32 %v1214_v47  ;;  %v1226_v55 = vand.u32 2147483648, %v1214_v47  ;;  %v1224_v57 = vand.u32 2147483647, %v1214_v47  ;;  %vm1220_vm12 = vweird.f32 %v1214_v47 }
0x1147   :  { %v1227_v33 = vor.u32 1.1754944e-38, %v1226_v55  ;;  %vm1225_vm14 = vcmp.eq.f32.partialorder %v1224_v57, 8.507059e+37 }
0x114b   :  { %v1703_v53 = vpop.eup %1702 }
0x114c   :  { %v1216_v54 = vmul.f32 %v1703_v53, %v1214_v47  ;;  %vm1221_vm11 = vweird.f32 %v1703_v53 }
0x114d   :  { %vm1222_vm13 = vmor %vm1220_vm12, %vm1221_vm11 }
0x114e   :  { %v1217_v27 = vsub.f32 1.0, %v1216_v54 }
0x1150   :  { %v1218_v56 = vmul.f32 %v1703_v53, %v1217_v27 }
0x1152   :  { %v1219_v3 = vadd.f32 %v1703_v53, %v1218_v56 }
0x1154   :  { %v1223_v59 = vsel %vm1222_vm13, %v1703_v53, %v1219_v3 }
0x1155   :  { %v1228_v13 = vsel %vm1225_vm14, %v1227_v33, %v1223_v59 }
0x1156   :  { %v1230_v31 = vmul.f32 %v1228_v13, %v1847_v17 }
0x1158   :  { %v1231_v62 = vadd.f32 %v1230_v31, %v1852_v35 }
0x115a   :  { %1234 = vrot.lane.b32.xlu1 %v1231_v62, %s1722_s22  ;;  %v1232_v2 = vmul.f32 %v1231_v62, %v2130_v50 }
0x116b   :  { %v1126_v63 = vpop.f32.mrf.mxu3 }
0x116c   :  { %v1146_v11 = vadd.f32 %v1145_v39, %v1126_v63 }
0x116e   :  { %v1149_v7 = vadd.f32 %v2156_v1, %v1146_v11 }
0x1170   :  { %v1150_v9 = vmul.f32 %v1149_v7, %v1847_v17 }
0x1172   :  { %v1554_v14 = vmul.f32 -1.442695, %v1150_v9 }
0x1173   :  { %v1128_v16 = vpop.f32.mrf.mxu3 }
0x1174   :  { %1704 = vpow2.f32 %v1554_v14 }
0x117a   :  { %v1705_v19 = vpop.eup %1704 }
0x117b   :  { %v1154_v43 = vadd.f32 1.0, %v1705_v19 }
0x117d   :  { %1706 = vrcp.f32 %v1154_v43  ;;  %v1166_v48 = vand.u32 2147483648, %v1154_v43  ;;  %v1164_v60 = vand.u32 2147483647, %v1154_v43  ;;  %vm1160_vm1 = vweird.f32 %v1154_v43 }
0x117f   :  { %v1167_v6 = vor.u32 1.1754944e-38, %v1166_v48  ;;  %vm1165_vm3 = vcmp.eq.f32.partialorder %v1164_v60, 8.507059e+37 }
0x1183   :  { %v1707_v20 = vpop.eup %1706 }
0x1184   :  { %v1156_v21 = vmul.f32 %v1707_v20, %v1154_v43  ;;  %vm1161_vm15 = vweird.f32 %v1707_v20 }
0x1185   :  { %vm1162_vm2 = vmor %vm1160_vm1, %vm1161_vm15 }
0x1186   :  { %v1157_v23 = vsub.f32 1.0, %v1156_v21  ;;  %v1607_v21 = vld [vmem:[%s2275_s7 + $0x8] sm:$0xff] }
0x1187   :  { %1423 = vmatpush.bf16.msra.mxu0 %v1607_v21 }
0x1188   :  { %v1158_v24 = vmul.f32 %v1707_v20, %v1157_v23 }
0x118a   :  { %v1159_v26 = vadd.f32 %v1707_v20, %v1158_v24 }
0x118c   :  { %v1163_v28 = vsel %vm1162_vm2, %v1707_v20, %v1159_v26 }
0x118d   :  { %v1168_v29 = vsel %vm1165_vm3, %v1167_v6, %v1163_v28 }
0x118e   :  { %v1170_v52 = vmul.f32 %v1168_v29, %v1847_v17 }
0x1190   :  { %v1171_v15 = vadd.f32 %v1170_v52, %v1852_v35 }
0x1192   :  { %1174 = vrot.lane.b32.xlu0 %v1171_v15, %s1722_s22  ;;  %v1172_v25 = vmul.f32 %v1171_v15, %v2135_v51 }
0x11cc   :  { %v1235_v30 = vpop.permute.xlu1 %1234 }
0x11cd   :  { %v1237_v32 = vmul.f32 %v1235_v30, %v1231_v62 }
0x11cf   :  { %1239 = vrot.lane.b32.xlu0 %v1237_v32, %s1723_s25 }
0x1204   :  { %v1175_v10 = vpop.permute.xlu0 %1174 }
0x1205   :  { %v1177_v22 = vmul.f32 %v1175_v10, %v1171_v15 }
0x1207   :  { %1179 = vrot.lane.b32.xlu2 %v1177_v22, %s1723_s25 }
0x1241   :  { %v1240_v34 = vpop.permute.xlu0 %1239 }
0x1242   :  { %v2166_v5 = vadd.f32 %v1240_v34, %v1232_v2 }
0x1244   :  { %1708 = vtanh.f32 %v2166_v5 }
0x124a   :  { %v1709_v12 = vpop.eup %1708 }
0x124b   :  { %1245 = vrot.lane.b32.xlu2 %v1709_v12, %s1722_s22 }
0x1261   :  { %v1180_v61 = vpop.permute.xlu2 %1179 }
0x1262   :  { %v2171_v37 = vadd.f32 %v1180_v61, %v1172_v25 }
0x1264   :  { %1710 = vtanh.f32 %v2171_v37 }
0x126a   :  { %v1711_v4 = vpop.eup %1710 }
0x126b   :  { %1185 = vrot.lane.b32.xlu1 %v1711_v4, %s1722_s22 }
0x12a5   :  { %v1246_v39 = vpop.permute.xlu2 %1245 }
0x12a6   :  { %v1248_v50 = vmul.f32 %v1246_v39, %v1231_v62 }
0x12a8   :  { %v1249_v40 = vpack.c.bf16 %v1248_v50, %v1248_v50 }
0x12aa   :  { %1271 = vrot.lane.b32.xlu1 %v1249_v40, %s1723_s25 }
0x12b2   :  { %350 = vrot.lane.b32.xlu1 %v1955_v18, %s1723_s25 }
0x12ba   :  { %631 = vrot.lane.b32.xlu1 %v2030_v58, %s1723_s25 }
0x12c2   :  { %1051 = vrot.lane.b32.xlu1 %v2140_v36, %s1723_s25 }
0x12ca   :  { %1336 = vrot.lane.b32.xlu1 %v1248_v50, %s1723_s25 }
0x12dd   :  { %v1186_v51 = vpop.permute.xlu1 %1185 }
0x12de   :  { %v1188_v41 = vmul.f32 %v1186_v51, %v1171_v15  ;;  %v1621_v15 = vld [vmem:[%s2276_s8] ss:$0 sm:$0xff] }
0x12e0   :  { %v1189_v8 = vpack.c.bf16 %v1188_v41, %v1188_v41 }
0x12e2   :  { %v1250_v42 = vunpack.c.l.b16 %v1189_v8 }
0x12e4   :  { %v1251_v44 = vpack.c.b16 %v1250_v42, %v1250_v42 }
0x12e6   :  { %1252 = vrot.lane.b32.xlu0 %v1251_v44, %s1723_s25 }
0x131c   :  { %v1272_v0 = vpop.permute.xlu1 %1271 }
0x131d   :  { %1558 = vmatmul.msk.bf16.vlgmr.msrb.gmra.mxu3 %vm110_vm0, %v1272_v0 }
0x1324   :  { %v351_v18 = vpop.permute.xlu1 %350 }
0x1325   :  { %354 = vst.msk [vmem:[#allocation3] sm:$0xf] %vm353_vm4, %v351_v18 }
0x132c   :  { %v632_v58 = vpop.permute.xlu1 %631 }
0x132d   :  { %634 = vst.msk [vmem:[#allocation3 + $0x8] sm:$0xf] %vm353_vm4, %v632_v58 }
0x1334   :  { %v1052_v36 = vpop.permute.xlu1 %1051 }
0x1335   :  { %1054 = vst.msk [vmem:[#allocation3 + $0x14] sm:$0xf] %vm353_vm4, %v1052_v36 }
0x133c   :  { %v1337_v46 = vpop.permute.xlu1 %1336 }
0x133d   :  { %1339 = vst.msk [vmem:[%s2274_s12] sm:$0xff] %vm110_vm0, %v1337_v46 }
0x1358   :  { %v1253_v47 = vpop.permute.xlu0 %1252 }
0x1359   :  { %1557 = vmatmul.msk.bf16.vlgmr.msrb.gmra.mxu2 %vm110_vm0, %v1253_v47 }
0x13a0   :  { %v1285_v53 = vpop.f32.mrf.mxu3 }
0x13a8   :  { %v1287_v54 = vpop.f32.mrf.mxu3 }
0x13dc   :  { %v1266_v27 = vpop.f32.mrf.mxu2 }
0x13dd   :  { %v1286_v55 = vadd.f32 %v1285_v53, %v1266_v27 }
0x13df   :  { %v1289_v56 = vadd.f32 %v2156_v1, %v1286_v55 }
0x13e1   :  { %v1290_v57 = vmul.f32 %v1289_v56, %v1847_v17 }
0x13e3   :  { %v1559_v3 = vmul.f32 -1.442695, %v1290_v57 }
0x13e4   :  { %v1268_v33 = vpop.f32.mrf.mxu2 }
0x13e5   :  { %1712 = vpow2.f32 %v1559_v3 }
0x13eb   :  { %v1713_v59 = vpop.eup %1712 }
0x13ec   :  { %v1294_v13 = vadd.f32 1.0, %v1713_v59 }
0x13ee   :  { %1714 = vrcp.f32 %v1294_v13  ;;  %v1306_v11 = vand.u32 2147483648, %v1294_v13  ;;  %v1304_v9 = vand.u32 2147483647, %v1294_v13  ;;  %vm1300_vm6 = vweird.f32 %v1294_v13 }
0x13f0   :  { %v1307_v16 = vor.u32 1.1754944e-38, %v1306_v11  ;;  %vm1305_vm8 = vcmp.eq.f32.partialorder %v1304_v9, 8.507059e+37 }
0x13f4   :  { %v1715_v31 = vpop.eup %1714 }
0x13f5   :  { %v1296_v62 = vmul.f32 %v1715_v31, %v1294_v13  ;;  %vm1301_vm5 = vweird.f32 %v1715_v31 }
0x13f6   :  { %vm1302_vm7 = vmor %vm1300_vm6, %vm1301_vm5 }
0x13f7   :  { %v1297_v63 = vsub.f32 1.0, %v1296_v62 }
0x13f9   :  { %v1298_v7 = vmul.f32 %v1715_v31, %v1297_v63 }
0x13fb   :  { %v1299_v14 = vadd.f32 %v1715_v31, %v1298_v7 }
0x13fd   :  { %v1303_v1 = vsel %vm1302_vm7, %v1715_v31, %v1299_v14 }
0x13fe   :  { %v1308_v19 = vsel %vm1305_vm8, %v1307_v16, %v1303_v1 }
0x13ff   :  { %v1310_v43 = vmul.f32 %v1308_v19, %v1847_v17  ;;  %v1606_v17 = vld [vmem:[%s2275_s7] sm:$0xff] }
0x1400   :  { %1424 = vmatpush.bf16.msra.mxu0 %v1606_v17 }
0x1401   :  { %v1311_v20 = vadd.f32 %v1310_v43, %v1852_v35 }
0x1403   :  { %1314 = vrot.lane.b32.xlu2 %v1311_v20, %s1722_s22  ;;  %v1312_v6 = vmul.f32 %v1311_v20, %v2171_v37 }
0x140b   :  { %491 = vrot.lane.b32.xlu2 %v1993_v38, %s1723_s25 }
0x1413   :  { %771 = vrot.lane.b32.xlu2 %v2067_v45, %s1723_s25 }
0x141b   :  { %1191 = vrot.lane.b32.xlu2 %v1189_v8, %s1723_s25 }
0x1423   :  { %1341 = vrot.lane.b32.xlu2 %v2166_v5, %s1724_s26 }
0x145d   :  { %v1315_v35 = vpop.permute.xlu2 %1314 }
0x145e   :  { %v1317_v38 = vmul.f32 %v1315_v35, %v1311_v20 }
0x1460   :  { %1319 = vrot.lane.b32.xlu0 %v1317_v38, %s1723_s25 }
0x1465   :  { %v492_v45 = vpop.permute.xlu2 %491 }
0x1466   :  { %494 = vst.msk [vmem:[#allocation3 + $0x4] sm:$0xf] %vm353_vm4, %v492_v45 }
0x146d   :  { %v772_v23 = vpop.permute.xlu2 %771  ;;  %v1602_v48 = vld [vmem:[#allocation3] sm:$0xff] }
0x146e   :  { %774 = vst.msk [vmem:[#allocation3 + $0xc] sm:$0xf] %vm353_vm4, %v772_v23  ;;  %1586 = vmatmul.msk.bf16.vlgmr.msra.gmra.mxu0 %vm110_vm0, %v1602_v48 }
0x1475   :  { %v1192_v24 = vpop.permute.xlu2 %1191  ;;  %v1603_v26 = vld [vmem:[#allocation3 + $0x8] sm:$0xff] }
0x1476   :  { %1194 = vst.msk [vmem:[#allocation3 + $0x18] sm:$0xf] %vm353_vm4, %v1192_v24 }
0x147d   :  { %v1342_v60 = vpop.permute.xlu2 %1341 }
0x147e   :  { %1344 = vst.msk [vmem:[%s2277_s13] sm:$0xff] %vm110_vm0, %v1342_v60  ;;  %1587 = vmatmul.msk.bf16.gmra.mxu0 %vm110_vm0, %v1603_v26 }
0x14d2   :  { %v1320_v28 = vpop.permute.xlu0 %1319 }
0x14d3   :  { %v1322_v29 = vadd.f32 %v1320_v28, %v1312_v6 }
0x14d5   :  { %1716 = vtanh.f32 %v1322_v29  ;;  %1352 = vrot.lane.b32.xlu1 %v1322_v29, %s1724_s26 }
0x14db   :  { %v1717_v52 = vpop.eup %1716 }
0x14dc   :  { %1325 = vrot.lane.b32.xlu0 %v1717_v52, %s1722_s22 }
0x14e4   :  { %911 = vrot.lane.b32.xlu0 %v2104_v49, %s1723_s25 }
0x14eb   :  { %v1426_v30 = vpop.f32.mrf.mxu0 }
0x14ec   :  { %v1427_v32 = vadd.f32 %v1621_v15, %v1426_v30 }
0x14ee   :  { %1446 = vst [vmem:[%s2278_s11] sm:$0xff] %v1427_v32 }
0x14f3   :  { %v1428_v10 = vpop.f32.mrf.mxu0 }
0x14f4   :  { %v1429_v22 = vadd.f32 %v1621_v15, %v1428_v10 }
0x14f6   :  { %1447 = vst [vmem:[%s2278_s11 + $0x8] sm:$0xff] %v1429_v22 }
0x14fb   :  { %v1431_v2 = vpop.f32.mrf.mxu0 }
0x14fc   :  { %v1432_v34 = vadd.f32 %v1621_v15, %v1431_v2 }
0x14fe   :  { %1448 = vst [vmem:[%s2278_s11 + $0x10] sm:$0xff] %v1432_v34 }
0x1503   :  { %v1433_v49 = vpop.f32.mrf.mxu0 }
0x1504   :  { %v1434_v5 = vadd.f32 %v1621_v15, %v1433_v49 }
0x1506   :  { %1449 = vst [vmem:[%s2278_s11 + $0x18] sm:$0xff] %v1434_v5 }
0x1547   :  { %v1353_v12 = vpop.permute.xlu1 %1352 }
0x1548   :  { %1561 = vst.msk [vmem:[%s2277_s13 + $0x8] sm:$0xff] %vm110_vm0, %v1353_v12 }
0x154e   :  { %v1326_v25 = vpop.permute.xlu0 %1325 }
0x154f   :  { %v1328_v61 = vmul.f32 %v1326_v25, %v1311_v20 }
0x1551   :  { %v1329_v37 = vpack.c.bf16 %v1328_v61, %v1328_v61 }
0x1553   :  { %1331 = vrot.lane.b32.xlu0 %v1329_v37, %s1723_s25 }
0x1556   :  { %v912_v4 = vpop.permute.xlu0 %911 }
0x1557   :  { %914 = vst.msk [vmem:[#allocation3 + $0x10] sm:$0xf] %vm353_vm4, %v912_v4 }
0x155b   :  { %1346 = vrot.lane.b32.xlu0 %v1328_v61, %s1723_s25 }
0x155e   :  { %v1604_v39 = vld [vmem:[#allocation3 + $0x10] sm:$0xff] }
0x155f   :  { %1588 = vmatmul.msk.bf16.gmra.mxu0 %vm110_vm0, %v1604_v39 }
0x15c5   :  { %v1332_v50 = vpop.permute.xlu0 %1331 }
0x15c6   :  { %1334 = vst.msk [vmem:[#allocation3 + $0x1c] sm:$0xf] %vm353_vm4, %v1332_v50 }
0x15cd   :  { %v1347_v40 = vpop.permute.xlu0 %1346  ;;  %v1605_v51 = vld [vmem:[#allocation3 + $0x18] sm:$0xff] }
0x15ce   :  { %1560 = vst.msk [vmem:[%s2274_s12 + $0x8] sm:$0xff] %vm110_vm0, %v1347_v40  ;;  %1589 = vmatmul.msk.bf16.gmra.mxu0 %vm110_vm0, %v1605_v51 }
0x15dc   :  { %v1436_v41 = vpop.f32.mrf.mxu0 }
0x15dd   :  { %v1437_v8 = vadd.f32 %v1621_v15, %v1436_v41 }
0x15df   :  { %1450 = vst [vmem:[%s2278_s11 + $0x20] sm:$0xff] %v1437_v8 }
0x15e4   :  { %v1438_v42 = vpop.f32.mrf.mxu0 }
0x15e5   :  { %v1439_v44 = vadd.f32 %v1621_v15, %v1438_v42 }
0x15e7   :  { %1451 = vst [vmem:[%s2278_s11 + $0x28] sm:$0xff] %v1439_v44 }
0x164b   :  { %v1441_v0 = vpop.f32.mrf.mxu0 }
0x164c   :  { %v1442_v18 = vadd.f32 %v1621_v15, %v1441_v0 }
0x164e   :  { %1452 = vst [vmem:[%s2278_s11 + $0x30] sm:$0xff] %v1442_v18 }
0x1653   :  { %v1443_v58 = vpop.f32.mrf.mxu0 }
0x1654   :  { %v1444_v36 = vadd.f32 %v1621_v15, %v1443_v58 }
0x1656   :  { %1453 = vst [vmem:[%s2278_s11 + $0x38] sm:$0xff] %v1444_v36 }

</bundles_post_ra>
